<compile_context>
chip_gen: v6e
topology: v6e:2x2x1
jax: 0.10.0
libtpu: 0.0.40
codegen_flags: <defaults>
</compile_context>

<pallas_src>
import functools

import jax
import jax.numpy as jnp
from jax.experimental import pallas as pl
from jax.experimental.pallas import tpu as pltpu

LANE = 128
_NEG = -1e30   # bias padding for classifier lanes -> ~zero softmax mass (must stay f32!)


def _round_up(n, m):
    return ((n + m - 1) // m) * m


def _device_kind():
    try:
        return jax.devices()[0].device_kind.lower()
    except Exception:
        return ""


def _vmem_capacity_bytes(kind):
    try:
        return int(pltpu.get_tpu_info().vmem_capacity_bytes)
    except Exception:
        return (64 << 20) if "v7" in kind else (128 << 20)


def seg_model_kernel(x_ref, lab_ref,
                     w_rep_ref, b_rep_ref,
                     w_cat_ref, b_cat_ref,
                     w_segclf_ref, b_segclf_ref,
                     loss_ref,
                     col_iota_ref, row_iota_ref, acc_ref,
                     *, tn, num_tiles, n_valid, c_pad):
    c = pl.program_id(0)   # core-split axis ("parallel"; size 1 on v5e/v6e)
    i = pl.program_id(1)   # row-tile reduction axis ("arbitrary")

    @pl.when(i == 0)
    def _init():
        acc_ref[...] = jnp.zeros_like(acc_ref)
        col_iota_ref[...] = jax.lax.broadcasted_iota(jnp.int32, col_iota_ref.shape, 1)
        row_iota_ref[...] = jax.lax.broadcasted_iota(jnp.int32, row_iota_ref.shape, 0)

    # ---- token module ------------------------------------------------------
    # token_rep: Linear(E -> H) + ReLU  (bf16 MXU inputs, f32 accumulation)
    x = x_ref[...]                                                  # (TN, Ep) bf16
    h = jnp.dot(x, w_rep_ref[...], preferred_element_type=jnp.float32)
    h = jnp.maximum(h + b_rep_ref[...], 0.0)                        # (TN, Hp) f32

    # token_clf (H -> Cp) and seg_rep (H -> Hp) fused into one lane-dense matmul
    hc = jnp.dot(h.astype(w_cat_ref.dtype), w_cat_ref[...],
                 preferred_element_type=jnp.float32) + b_cat_ref[...]
    tok_logits = hc[:, :c_pad]                                      # (TN, Cp) f32
    s = jnp.maximum(hc[:, c_pad:], 0.0)                             # (TN, Hp) f32

    # seg_clf: Linear(H -> Cp)
    seg_logits = jnp.dot(s.astype(w_segclf_ref.dtype), w_segclf_ref[...],
                         preferred_element_type=jnp.float32) + b_segclf_ref[...]

    # ---- cross-entropy (f32, lane-dense 128-wide reductions) ----------------
    labels = lab_ref[...]                                           # (TN, 2) int32
    tok_lab = labels[:, 0:1]
    seg_lab = labels[:, 1:2]
    col = col_iota_ref[...]                                         # (1, Cp) int32

    def _nll(logits, labels_col):
        m = jnp.max(logits, axis=-1, keepdims=True)
        z = logits - m
        lse = jnp.log(jnp.sum(jnp.exp(z), axis=-1, keepdims=True))
        picked = jnp.sum(jnp.where(col == labels_col, z, 0.0),
                         axis=-1, keepdims=True)                    # z[label]
        return lse - picked                                         # (TN, 1)

    per_row = _nll(tok_logits, tok_lab) + _nll(seg_logits, seg_lab)

    # mask rows introduced by padding of N; accumulate as a (TN,1) vector
    row0 = (c * num_tiles + i) * tn
    valid = (row_iota_ref[...] + row0) < n_valid
    acc_ref[...] += jnp.where(valid, per_row, 0.0)

    @pl.when(i == num_tiles - 1)
    def _finalize():
        # single sublane reduce + one divide (mean over true N)
        loss_ref[0] = jnp.sum(acc_ref[...], keepdims=True) * jnp.float32(1.0 / n_valid)


def seg_model_forward(x, tok_labels, seg_labels, params, *, tn_max=None):
    """x: (B, T, E) f32; tok_labels/seg_labels: (B, T) int. Returns scalar loss."""
    B, T, E = x.shape
    N = B * T
    H = params["w_rep"].shape[1]
    C_tok = params["w_tokclf"].shape[1]
    C_seg = params["w_segclf"].shape[1]

    kind = _device_kind()
    core_split = 2 if "v7" in kind else 1        # megacore only on v7x
    if tn_max is None:
        tn_max = 512 if "v7" in kind else 1024   # 64 MiB vs 128 MiB VMEM

    Ep = _round_up(E, LANE)
    Hp = _round_up(H, LANE)
    Cp = max(_round_up(C_tok, LANE), _round_up(C_seg, LANE))

    # row tiling: optional 2-way outer split (v7x dual TC), inner reduction over tiles
    # tn is a multiple of 16: bf16 native sublane tile is (16, 128).
    rows_per_core = -(-N // core_split)
    tn = min(tn_max, _round_up(max(rows_per_core, 1), 16))
    num_tiles = -(-rows_per_core // tn)
    n_pad = core_split * num_tiles * tn

    f32, bf16 = jnp.float32, jnp.bfloat16

    def pad2(a, r, c, fill=0.0):
        a = a.astype(f32)
        return jnp.pad(a, ((0, r - a.shape[0]), (0, c - a.shape[1])),
                       constant_values=fill)

    # activations / labels (rows zero-padded, masked in-kernel)
    # TODO(synk): the N-axis pad makes an extra HBM copy; for very large N the
    # ragged last tile could instead be handled purely by the in-kernel mask.
    x2 = pad2(x.reshape(N, E), n_pad, Ep).astype(bf16)
    labs = jnp.concatenate([tok_labels.reshape(N, 1), seg_labels.reshape(N, 1)],
                           axis=1).astype(jnp.int32)
    labs = jnp.pad(labs, ((0, n_pad - N), (0, 0)))

    # weights zero-padded to lane-dense shapes; classifier bias padded with -1e30
    w_rep = pad2(params["w_rep"], Ep, Hp).astype(bf16)
    b_rep = pad2(params["b_rep"], 1, Hp)
    w_tok = pad2(params["w_tokclf"], Hp, Cp)
    b_tok = jnp.pad(params["b_tokclf"].astype(f32), ((0, 0), (0, Cp - C_tok)),
                    constant_values=_NEG)
    w_srep = pad2(params["w_segrep"], Hp, Hp)
    b_srep = pad2(params["b_segrep"], 1, Hp)
    w_cat = jnp.concatenate([w_tok, w_srep], axis=1).astype(bf16)   # (Hp, Cp+Hp)
    b_cat = jnp.concatenate([b_tok, b_srep], axis=1)                # (1, Cp+Hp)
    w_sclf = pad2(params["w_segclf"], Hp, Cp).astype(bf16)
    b_sclf = jnp.pad(params["b_segclf"].astype(f32), ((0, 0), (0, Cp - C_seg)),
                     constant_values=_NEG)

    # -1e30 padding is only safe in f32; bf16 would overflow to -inf -> NaN CE.
    assert b_cat.dtype == jnp.float32 and b_sclf.dtype == jnp.float32

    row_map = lambda c, i: (c * num_tiles + i, 0)
    res_map = lambda c, i: (0, 0)

    def build_in_specs(single_buffer_weights):
        if single_buffer_weights:
            resident = lambda shp: pl.BlockSpec(shp, res_map,
                                                pipeline_mode=pl.Buffered(1))
        else:
            resident = lambda shp: pl.BlockSpec(shp, res_map)
        return [
            pl.BlockSpec((tn, Ep), row_map),        # x tile (streamed, 2-buffered)
            pl.BlockSpec((tn, 2), row_map),         # packed [token|segment] labels
            resident((Ep, Hp)),                     # w_rep (resident)
            resident((1, Hp)),                      # b_rep
            resident((Hp, Cp + Hp)),                # fused [w_tokclf | w_segrep]
            resident((1, Cp + Hp)),                 # fused bias
            resident((Hp, Cp)),                     # w_segclf
            resident((1, Cp)),                      # b_segclf
        ]

    # VMEM budget: streaming tiles double-buffered, weights counted conservatively
    # (2x, covers the fallback path), plus scratch + live f32 intermediates.
    weight_bytes = 2 * (Ep * Hp + Hp * (Cp + Hp) + Hp * Cp) * 2
    bias_bytes = 2 * (Hp + (Cp + Hp) + Cp) * 4
    tile_bytes = 2 * (tn * Ep * 2 + tn * 2 * 4)
    scratch_bytes = Cp * 4 + tn * 4 + tn * 4
    live_bytes = 6 * tn * max(Hp, Cp + Hp) * 4
    footprint = tile_bytes + weight_bytes + bias_bytes + scratch_bytes + live_bytes
    vmem_cap = _vmem_capacity_bytes(kind)
    vmem_limit = int(min(int(vmem_cap * 0.75), max(4 << 20, 2 * footprint)))

    kernel = functools.partial(seg_model_kernel, tn=tn, num_tiles=num_tiles,
                               n_valid=N, c_pad=Cp)

    def call(single_buffer_weights):
        return pl.pallas_call(
            kernel,
            out_shape=jax.ShapeDtypeStruct((core_split, 1, 1), f32),
            grid_spec=pltpu.PrefetchScalarGridSpec(
                num_scalar_prefetch=0,
                grid=(core_split, num_tiles),
                in_specs=build_in_specs(single_buffer_weights),
                out_specs=pl.BlockSpec((1, 1, 1), lambda c, i: (c, 0, 0)),
                scratch_shapes=[
                    pltpu.VMEM((1, Cp), jnp.int32),    # lane iota (one-hot compare)
                    pltpu.VMEM((tn, 1), jnp.int32),    # row iota (N-padding mask)
                    pltpu.VMEM((tn, 1), f32),          # running per-row loss sum
                ]),
            compiler_params=pltpu.CompilerParams(
                dimension_semantics=("parallel", "arbitrary"),
                vmem_limit_bytes=vmem_limit),
        )(x2, labs, w_rep, b_rep, w_cat, b_cat, w_sclf, b_sclf)

    try:
        partials = call(True)
    except Exception:
        # TODO(synk): pl.Buffered(1) rejected on this jax/Mosaic version; fall
        # back to default double-buffered resident weights (correct, more VMEM).
        partials = call(False)

    return jnp.sum(partials)


def init_params(key, emb_dim, hidden, n_tok_classes, n_seg_classes):
    """Deterministic PyTorch-Linear-style uniform(+-1/sqrt(fan_in)) init."""
    ks = jax.random.split(key, 8)

    def lin(kw, kb, fan_in, fan_out):
        bound = 1.0 / jnp.sqrt(jnp.float32(fan_in))
        w = jax.random.uniform(kw, (fan_in, fan_out), jnp.float32, -bound, bound)
        b = jax.random.uniform(kb, (1, fan_out), jnp.float32, -bound, bound)
        return w, b

    w_rep, b_rep = lin(ks[0], ks[1], emb_dim, hidden)
    w_tokclf, b_tokclf = lin(ks[2], ks[3], hidden, n_tok_classes)
    w_segrep, b_segrep = lin(ks[4], ks[5], hidden, hidden)
    w_segclf, b_segclf = lin(ks[6], ks[7], hidden, n_seg_classes)
    return dict(w_rep=w_rep, b_rep=b_rep,
                w_tokclf=w_tokclf, b_tokclf=b_tokclf,
                w_segrep=w_segrep, b_segrep=b_segrep,
                w_segclf=w_segclf, b_segclf=b_segclf)


def _ref_forward(x, tl, sl, p):
    """Pure-JAX reference of the same pipeline with the same bf16 MXU policy."""
    def mm(a, w):
        return jnp.dot(a.astype(jnp.bfloat16), w.astype(jnp.bfloat16),
                       preferred_element_type=jnp.float32)

    x2 = x.reshape(-1, x.shape[-1])
    h = jnp.maximum(mm(x2, p["w_rep"]) + p["b_rep"], 0.0)
    tlg = mm(h, p["w_tokclf"]) + p["b_tokclf"]
    tloss = -jnp.mean(jnp.take_along_axis(jax.nn.log_softmax(tlg, -1),
                                          tl.reshape(-1, 1), axis=-1))
    s = jnp.maximum(mm(h, p["w_segrep"]) + p["b_segrep"], 0.0)
    slg = mm(s, p["w_segclf"]) + p["b_segclf"]
    sloss = -jnp.mean(jnp.take_along_axis(jax.nn.log_softmax(slg, -1),
                                          sl.reshape(-1, 1), axis=-1))
    return tloss + sloss


if __name__ == "__main__":
    B, T, E, H = 2, 8, 32, 32
    N_TOK_CLASSES = 3   # e.g. BIO seg task labels
    N_SEG_CLASSES = 4   # e.g. segment "label" task

    key = jax.random.PRNGKey(0)
    k_x, k_tl, k_sl, k_p = jax.random.split(key, 4)

    x = jax.random.normal(k_x, (B, T, E), dtype=jnp.float32)
    tok_labels = jax.random.randint(k_tl, (B, T), 0, N_TOK_CLASSES, dtype=jnp.int32)
    seg_labels = jax.random.randint(k_sl, (B, T), 0, N_SEG_CLASSES, dtype=jnp.int32)
    params = init_params(k_p, E, H, N_TOK_CLASSES, N_SEG_CLASSES)

    total_loss = seg_model_forward(x, tok_labels, seg_labels, params)
    jax.block_until_ready(total_loss)

    expected = _ref_forward(x, tok_labels, seg_labels, params)
    assert jnp.isfinite(total_loss), total_loss
    assert jnp.allclose(total_loss, expected, atol=1e-3, rtol=1e-3), (
        total_loss, expected)

    print("KERNEL_OK")
</pallas_src>

<mosaic_0001>
module attributes {stable_mosaic.version = 11 : i64} {
  func.func @seg_model_kernel(%arg0: i32, %arg1: i32, %arg2: memref<16x128xbf16, #tpu.memory_space<vmem>>, %arg3: memref<16x2xi32, #tpu.memory_space<vmem>>, %arg4: memref<128x128xbf16, #tpu.memory_space<vmem>>, %arg5: memref<1x128xf32, #tpu.memory_space<vmem>>, %arg6: memref<128x256xbf16, #tpu.memory_space<vmem>>, %arg7: memref<1x256xf32, #tpu.memory_space<vmem>>, %arg8: memref<128x128xbf16, #tpu.memory_space<vmem>>, %arg9: memref<1x128xf32, #tpu.memory_space<vmem>>, %arg10: memref<1x1x1xf32, #tpu.memory_space<vmem>>, %arg11: memref<1x128xi32, #tpu.memory_space<vmem>>, %arg12: memref<16x1xi32, #tpu.memory_space<vmem>>, %arg13: memref<16x1xf32, #tpu.memory_space<vmem>>) attributes {dimension_semantics = [#tpu.dimension_semantics<parallel>, #tpu.dimension_semantics<arbitrary>], iteration_bounds = array<i64: 1, 1>, scalar_prefetch = 0 : i64, scratch_operands = 3 : i64, tpu.core_type = #tpu.core_type<tc>, window_params = [{transform_indices = @transform_0, window_bounds = array<i64: 16, 128>}, {transform_indices = @transform_1, window_bounds = array<i64: 16, 2>}, {pipeline_mode = #tpu.pipeline_mode<synchronous>, transform_indices = @transform_2, window_bounds = array<i64: 128, 128>}, {pipeline_mode = #tpu.pipeline_mode<synchronous>, transform_indices = @transform_3, window_bounds = array<i64: 1, 128>}, {pipeline_mode = #tpu.pipeline_mode<synchronous>, transform_indices = @transform_4, window_bounds = array<i64: 128, 256>}, {pipeline_mode = #tpu.pipeline_mode<synchronous>, transform_indices = @transform_5, window_bounds = array<i64: 1, 256>}, {pipeline_mode = #tpu.pipeline_mode<synchronous>, transform_indices = @transform_6, window_bounds = array<i64: 128, 128>}, {pipeline_mode = #tpu.pipeline_mode<synchronous>, transform_indices = @transform_7, window_bounds = array<i64: 1, 128>}, {transform_indices = @transform_8, window_bounds = array<i64: 1, 1, 1>}]} {
    %c0_i32 = arith.constant 0 : i32
    %0 = arith.cmpi eq, %arg1, %c0_i32 : i32
    %1 = arith.extui %0 : i1 to i32
    %c0_i32_0 = arith.constant 0 : i32
    %2 = arith.cmpi ne, %1, %c0_i32_0 : i32
    scf.if %2 {
      %cst_40 = arith.constant 0.000000e+00 : f32
      %80 = vector.broadcast %cst_40 : f32 to vector<16x1xf32>
      %c0_41 = arith.constant 0 : index
      %c0_42 = arith.constant 0 : index
      %81 = vector.load %arg13[%c0_41, %c0_42] : memref<16x1xf32, #tpu.memory_space<vmem>>, vector<16x1xf32>
      tpu.vector_store %arg13[%c0_41, %c0_42], %80 {strides = array<i32>} : memref<16x1xf32, #tpu.memory_space<vmem>>, vector<16x1xf32>,
      %82 = tpu.iota {dimensions = array<i32: 1>} : vector<1x128xi32>
      %c0_43 = arith.constant 0 : index
      %c0_44 = arith.constant 0 : index
      %83 = vector.load %arg11[%c0_43, %c0_44] : memref<1x128xi32, #tpu.memory_space<vmem>>, vector<1x128xi32>
      tpu.vector_store %arg11[%c0_43, %c0_44], %82 {strides = array<i32>} : memref<1x128xi32, #tpu.memory_space<vmem>>, vector<1x128xi32>,
      %84 = tpu.iota {dimensions = array<i32: 0>} : vector<16x1xi32>
      %c0_45 = arith.constant 0 : index
      %c0_46 = arith.constant 0 : index
      %85 = vector.load %arg12[%c0_45, %c0_46] : memref<16x1xi32, #tpu.memory_space<vmem>>, vector<16x1xi32>
      tpu.vector_store %arg12[%c0_45, %c0_46], %84 {strides = array<i32>} : memref<16x1xi32, #tpu.memory_space<vmem>>, vector<16x1xi32>,
    } else {
    }
    %c0 = arith.constant 0 : index
    %c0_1 = arith.constant 0 : index
    %3 = vector.load %arg2[%c0, %c0_1] : memref<16x128xbf16, #tpu.memory_space<vmem>>, vector<16x128xbf16>
    %c0_2 = arith.constant 0 : index
    %c0_3 = arith.constant 0 : index
    %4 = vector.load %arg4[%c0_2, %c0_3] : memref<128x128xbf16, #tpu.memory_space<vmem>>, vector<128x128xbf16>
    %cst = arith.constant dense<0.000000e+00> : vector<16x128xf32>
    %5 = tpu.matmul %3, %4, %cst {dimension_numbers = #tpu.dot_dimension_numbers<[1], [0], [0], [1], [0, 0, 1, 1], [], []>} : vector<16x128xbf16>, vector<128x128xbf16>, vector<16x128xf32> -> vector<16x128xf32>
    %c0_4 = arith.constant 0 : index
    %c0_5 = arith.constant 0 : index
    %6 = vector.load %arg5[%c0_4, %c0_5] : memref<1x128xf32, #tpu.memory_space<vmem>>, vector<1x128xf32>
    %7 = vector.broadcast %6 : vector<1x128xf32> to vector<16x128xf32>
    %8 = arith.addf %5, %7 : vector<16x128xf32>
    %cst_6 = arith.constant 0.000000e+00 : f32
    %9 = vector.broadcast %cst_6 : f32 to vector<16x128xf32>
    %10 = arith.maximumf %8, %9 : vector<16x128xf32>
    %11 = arith.truncf %10 : vector<16x128xf32> to vector<16x128xbf16>
    %c0_7 = arith.constant 0 : index
    %c0_8 = arith.constant 0 : index
    %12 = vector.load %arg6[%c0_7, %c0_8] : memref<128x256xbf16, #tpu.memory_space<vmem>>, vector<128x256xbf16>
    %cst_9 = arith.constant dense<0.000000e+00> : vector<16x256xf32>
    %13 = tpu.matmul %11, %12, %cst_9 {dimension_numbers = #tpu.dot_dimension_numbers<[1], [0], [0], [1], [0, 0, 1, 1], [], []>} : vector<16x128xbf16>, vector<128x256xbf16>, vector<16x256xf32> -> vector<16x256xf32>
    %c0_10 = arith.constant 0 : index
    %c0_11 = arith.constant 0 : index
    %14 = vector.load %arg7[%c0_10, %c0_11] : memref<1x256xf32, #tpu.memory_space<vmem>>, vector<1x256xf32>
    %15 = vector.broadcast %14 : vector<1x256xf32> to vector<16x256xf32>
    %16 = arith.addf %13, %15 : vector<16x256xf32>
    %17 = vector.extract_strided_slice %16 {offsets = [0, 0], sizes = [16, 128], strides = [1, 1]} : vector<16x256xf32> to vector<16x128xf32>
    %18 = vector.extract_strided_slice %16 {offsets = [0, 128], sizes = [16, 128], strides = [1, 1]} : vector<16x256xf32> to vector<16x128xf32>
    %cst_12 = arith.constant 0.000000e+00 : f32
    %19 = vector.broadcast %cst_12 : f32 to vector<16x128xf32>
    %20 = arith.maximumf %18, %19 : vector<16x128xf32>
    %21 = arith.truncf %20 : vector<16x128xf32> to vector<16x128xbf16>
    %c0_13 = arith.constant 0 : index
    %c0_14 = arith.constant 0 : index
    %22 = vector.load %arg8[%c0_13, %c0_14] : memref<128x128xbf16, #tpu.memory_space<vmem>>, vector<128x128xbf16>
    %cst_15 = arith.constant dense<0.000000e+00> : vector<16x128xf32>
    %23 = tpu.matmul %21, %22, %cst_15 {dimension_numbers = #tpu.dot_dimension_numbers<[1], [0], [0], [1], [0, 0, 1, 1], [], []>} : vector<16x128xbf16>, vector<128x128xbf16>, vector<16x128xf32> -> vector<16x128xf32>
    %c0_16 = arith.constant 0 : index
    %c0_17 = arith.constant 0 : index
    %24 = vector.load %arg9[%c0_16, %c0_17] : memref<1x128xf32, #tpu.memory_space<vmem>>, vector<1x128xf32>
    %25 = vector.broadcast %24 : vector<1x128xf32> to vector<16x128xf32>
    %26 = arith.addf %23, %25 : vector<16x128xf32>
    %c0_18 = arith.constant 0 : index
    %c0_19 = arith.constant 0 : index
    %27 = vector.load %arg3[%c0_18, %c0_19] : memref<16x2xi32, #tpu.memory_space<vmem>>, vector<16x2xi32>
    %28 = vector.extract_strided_slice %27 {offsets = [0, 0], sizes = [16, 1], strides = [1, 1]} : vector<16x2xi32> to vector<16x1xi32>
    %29 = vector.extract_strided_slice %27 {offsets = [0, 1], sizes = [16, 1], strides = [1, 1]} : vector<16x2xi32> to vector<16x1xi32>
    %c0_20 = arith.constant 0 : index
    %c0_21 = arith.constant 0 : index
    %30 = vector.load %arg11[%c0_20, %c0_21] : memref<1x128xi32, #tpu.memory_space<vmem>>, vector<1x128xi32>
    %cst_22 = arith.constant dense<0xFF800000> : vector<16xf32>
    %31 = vector.multi_reduction <maximumf>, %17, %cst_22 [1] : vector<16x128xf32> to vector<16xf32>
    %32 = vector.shape_cast %31 : vector<16xf32> to vector<16x1xf32>
    %33 = vector.broadcast %32 : vector<16x1xf32> to vector<16x128xf32>
    %34 = arith.subf %17, %33 : vector<16x128xf32>
    %35 = math.exp %34 : vector<16x128xf32>
    %cst_23 = arith.constant dense<0.000000e+00> : vector<16xf32>
    %36 = vector.multi_reduction <add>, %35, %cst_23 [1] : vector<16x128xf32> to vector<16xf32>
    %37 = vector.shape_cast %36 : vector<16xf32> to vector<16x1xf32>
    %38 = math.log %37 : vector<16x1xf32>
    %39 = vector.broadcast %30 : vector<1x128xi32> to vector<16x128xi32>
    %40 = vector.broadcast %28 : vector<16x1xi32> to vector<16x128xi32>
    %41 = arith.cmpi eq, %39, %40 : vector<16x128xi32>
    %cst_24 = arith.constant 0.000000e+00 : f32
    %42 = vector.broadcast %cst_24 : f32 to vector<16x128xf32>
    %43 = arith.select %41, %34, %42 : vector<16x128xi1>, vector<16x128xf32>
    %cst_25 = arith.constant dense<0.000000e+00> : vector<16xf32>
    %44 = vector.multi_reduction <add>, %43, %cst_25 [1] : vector<16x128xf32> to vector<16xf32>
    %45 = vector.shape_cast %44 : vector<16xf32> to vector<16x1xf32>
    %46 = arith.subf %38, %45 : vector<16x1xf32>
    %cst_26 = arith.constant dense<0xFF800000> : vector<16xf32>
    %47 = vector.multi_reduction <maximumf>, %26, %cst_26 [1] : vector<16x128xf32> to vector<16xf32>
    %48 = vector.shape_cast %47 : vector<16xf32> to vector<16x1xf32>
    %49 = vector.broadcast %48 : vector<16x1xf32> to vector<16x128xf32>
    %50 = arith.subf %26, %49 : vector<16x128xf32>
    %51 = math.exp %50 : vector<16x128xf32>
    %cst_27 = arith.constant dense<0.000000e+00> : vector<16xf32>
    %52 = vector.multi_reduction <add>, %51, %cst_27 [1] : vector<16x128xf32> to vector<16xf32>
    %53 = vector.shape_cast %52 : vector<16xf32> to vector<16x1xf32>
    %54 = math.log %53 : vector<16x1xf32>
    %55 = vector.broadcast %30 : vector<1x128xi32> to vector<16x128xi32>
    %56 = vector.broadcast %29 : vector<16x1xi32> to vector<16x128xi32>
    %57 = arith.cmpi eq, %55, %56 : vector<16x128xi32>
    %cst_28 = arith.constant 0.000000e+00 : f32
    %58 = vector.broadcast %cst_28 : f32 to vector<16x128xf32>
    %59 = arith.select %57, %50, %58 : vector<16x128xi1>, vector<16x128xf32>
    %cst_29 = arith.constant dense<0.000000e+00> : vector<16xf32>
    %60 = vector.multi_reduction <add>, %59, %cst_29 [1] : vector<16x128xf32> to vector<16xf32>
    %61 = vector.shape_cast %60 : vector<16xf32> to vector<16x1xf32>
    %62 = arith.subf %54, %61 : vector<16x1xf32>
    %63 = arith.addf %46, %62 : vector<16x1xf32>
    %c1_i32 = arith.constant 1 : i32
    %64 = arith.muli %arg0, %c1_i32 : i32
    %65 = arith.addi %64, %arg1 : i32
    %c16_i32 = arith.constant 16 : i32
    %66 = arith.muli %65, %c16_i32 : i32
    %c0_30 = arith.constant 0 : index
    %c0_31 = arith.constant 0 : index
    %67 = vector.load %arg12[%c0_30, %c0_31] : memref<16x1xi32, #tpu.memory_space<vmem>>, vector<16x1xi32>
    %68 = vector.broadcast %66 : i32 to vector<16x1xi32>
    %69 = arith.addi %67, %68 : vector<16x1xi32>
    %c16_i32_32 = arith.constant 16 : i32
    %70 = vector.broadcast %c16_i32_32 : i32 to vector<16x1xi32>
    %71 = arith.cmpi slt, %69, %70 : vector<16x1xi32>
    %c0_33 = arith.constant 0 : index
    %c0_34 = arith.constant 0 : index
    %72 = vector.load %arg13[%c0_33, %c0_34] : memref<16x1xf32, #tpu.memory_space<vmem>>, vector<16x1xf32>
    %cst_35 = arith.constant 0.000000e+00 : f32
    %73 = vector.broadcast %cst_35 : f32 to vector<16x1xf32>
    %74 = arith.select %71, %63, %73 : vector<16x1xi1>, vector<16x1xf32>
    %75 = arith.addf %72, %74 : vector<16x1xf32>
    %c0_36 = arith.constant 0 : index
    %c0_37 = arith.constant 0 : index
    %76 = vector.load %arg13[%c0_36, %c0_37] : memref<16x1xf32, #tpu.memory_space<vmem>>, vector<16x1xf32>
    tpu.vector_store %arg13[%c0_36, %c0_37], %75 {strides = array<i32>} : memref<16x1xf32, #tpu.memory_space<vmem>>, vector<16x1xf32>,
    %c0_i32_38 = arith.constant 0 : i32
    %77 = arith.cmpi eq, %arg1, %c0_i32_38 : i32
    %78 = arith.extui %77 : i1 to i32
    %c0_i32_39 = arith.constant 0 : i32
    %79 = arith.cmpi ne, %78, %c0_i32_39 : i32
    scf.if %79 {
      %c0_40 = arith.constant 0 : index
      %c0_41 = arith.constant 0 : index
      %80 = vector.load %arg13[%c0_40, %c0_41] : memref<16x1xf32, #tpu.memory_space<vmem>>, vector<16x1xf32>
      %81 = vector.shape_cast %80 : vector<16x1xf32> to vector<1x16x1xf32>
      %cst_42 = arith.constant dense<0.000000e+00> : vector<1xf32>
      %82 = vector.multi_reduction <add>, %81, %cst_42 [1, 2] : vector<1x16x1xf32> to vector<1xf32>
      %83 = vector.shape_cast %82 : vector<1xf32> to vector<1x1x1xf32>
      %84 = vector.extract %83[0, 0, 0] : f32 from vector<1x1x1xf32>
      %85 = vector.broadcast %84 : f32 to vector<1x1xf32>
      %cst_43 = arith.constant 6.250000e-02 : f32
      %86 = vector.broadcast %cst_43 : f32 to vector<1x1xf32>
      %87 = arith.mulf %85, %86 : vector<1x1xf32>
      %c0_44 = arith.constant 0 : index
      %c0_45 = arith.constant 0 : index
      %c0_46 = arith.constant 0 : index
      %88 = vector.load %arg10[%c0_44, %c0_45, %c0_46] : memref<1x1x1xf32, #tpu.memory_space<vmem>>, vector<1x1x1xf32>
      %89 = vector.shape_cast %88 : vector<1x1x1xf32> to vector<1x1xf32>
      %90 = vector.shape_cast %87 : vector<1x1xf32> to vector<1x1x1xf32>
      tpu.vector_store %arg10[%c0_44, %c0_45, %c0_46], %90 {strides = array<i32>} : memref<1x1x1xf32, #tpu.memory_space<vmem>>, vector<1x1x1xf32>,
    } else {
    }
    return
  }
  func.func @transform_0(%arg0: i32, %arg1: i32) -> (i32, i32) {
    %c1_i32 = arith.constant 1 : i32
    %0 = arith.muli %arg0, %c1_i32 : i32
    %1 = arith.addi %0, %arg1 : i32
    %c0_i32 = arith.constant 0 : i32
    %c0_i32_0 = arith.constant 0 : i32
    return %1, %c0_i32 : i32, i32
  }
  func.func @transform_1(%arg0: i32, %arg1: i32) -> (i32, i32) {
    %c1_i32 = arith.constant 1 : i32
    %0 = arith.muli %arg0, %c1_i32 : i32
    %1 = arith.addi %0, %arg1 : i32
    %c0_i32 = arith.constant 0 : i32
    %c0_i32_0 = arith.constant 0 : i32
    return %1, %c0_i32 : i32, i32
  }
  func.func @transform_2(%arg0: i32, %arg1: i32) -> (i32, i32) {
    %c0_i32 = arith.constant 0 : i32
    %c0_i32_0 = arith.constant 0 : i32
    %c0_i32_1 = arith.constant 0 : i32
    return %c0_i32, %c0_i32_0 : i32, i32
  }
  func.func @transform_3(%arg0: i32, %arg1: i32) -> (i32, i32) {
    %c0_i32 = arith.constant 0 : i32
    %c0_i32_0 = arith.constant 0 : i32
    %c0_i32_1 = arith.constant 0 : i32
    return %c0_i32, %c0_i32_0 : i32, i32
  }
  func.func @transform_4(%arg0: i32, %arg1: i32) -> (i32, i32) {
    %c0_i32 = arith.constant 0 : i32
    %c0_i32_0 = arith.constant 0 : i32
    %c0_i32_1 = arith.constant 0 : i32
    return %c0_i32, %c0_i32_0 : i32, i32
  }
  func.func @transform_5(%arg0: i32, %arg1: i32) -> (i32, i32) {
    %c0_i32 = arith.constant 0 : i32
    %c0_i32_0 = arith.constant 0 : i32
    %c0_i32_1 = arith.constant 0 : i32
    return %c0_i32, %c0_i32_0 : i32, i32
  }
  func.func @transform_6(%arg0: i32, %arg1: i32) -> (i32, i32) {
    %c0_i32 = arith.constant 0 : i32
    %c0_i32_0 = arith.constant 0 : i32
    %c0_i32_1 = arith.constant 0 : i32
    return %c0_i32, %c0_i32_0 : i32, i32
  }
  func.func @transform_7(%arg0: i32, %arg1: i32) -> (i32, i32) {
    %c0_i32 = arith.constant 0 : i32
    %c0_i32_0 = arith.constant 0 : i32
    %c0_i32_1 = arith.constant 0 : i32
    return %c0_i32, %c0_i32_0 : i32, i32
  }
  func.func @transform_8(%arg0: i32, %arg1: i32) -> (i32, i32, i32) {
    %c0_i32 = arith.constant 0 : i32
    %c0_i32_0 = arith.constant 0 : i32
    %c0_i32_1 = arith.constant 0 : i32
    return %arg0, %c0_i32, %c0_i32_0 : i32, i32, i32
  }
}

module attributes {stable_mosaic.version = 11 : i64} {
  func.func @seg_model_kernel(%arg0: i32, %arg1: i32, %arg2: memref<16x128xbf16, #tpu.memory_space<vmem>>, %arg3: memref<16x2xi32, #tpu.memory_space<vmem>>, %arg4: memref<128x128xbf16, #tpu.memory_space<vmem>>, %arg5: memref<1x128xf32, #tpu.memory_space<vmem>>, %arg6: memref<128x256xbf16, #tpu.memory_space<vmem>>, %arg7: memref<1x256xf32, #tpu.memory_space<vmem>>, %arg8: memref<128x128xbf16, #tpu.memory_space<vmem>>, %arg9: memref<1x128xf32, #tpu.memory_space<vmem>>, %arg10: memref<1x1x1xf32, #tpu.memory_space<vmem>>, %arg11: memref<1x128xi32, #tpu.memory_space<vmem>>, %arg12: memref<16x1xi32, #tpu.memory_space<vmem>>, %arg13: memref<16x1xf32, #tpu.memory_space<vmem>>) attributes {dimension_semantics = [#tpu.dimension_semantics<parallel>, #tpu.dimension_semantics<arbitrary>], iteration_bounds = array<i64: 1, 1>, scalar_prefetch = 0 : i64, scratch_operands = 3 : i64, tpu.core_type = #tpu.core_type<tc>, window_params = [{transform_indices = @transform_0, window_bounds = array<i64: 16, 128>}, {transform_indices = @transform_1, window_bounds = array<i64: 16, 2>}, {pipeline_mode = #tpu.pipeline_mode<synchronous>, transform_indices = @transform_2, window_bounds = array<i64: 128, 128>}, {pipeline_mode = #tpu.pipeline_mode<synchronous>, transform_indices = @transform_3, window_bounds = array<i64: 1, 128>}, {pipeline_mode = #tpu.pipeline_mode<synchronous>, transform_indices = @transform_4, window_bounds = array<i64: 128, 256>}, {pipeline_mode = #tpu.pipeline_mode<synchronous>, transform_indices = @transform_5, window_bounds = array<i64: 1, 256>}, {pipeline_mode = #tpu.pipeline_mode<synchronous>, transform_indices = @transform_6, window_bounds = array<i64: 128, 128>}, {pipeline_mode = #tpu.pipeline_mode<synchronous>, transform_indices = @transform_7, window_bounds = array<i64: 1, 128>}, {transform_indices = @transform_8, window_bounds = array<i64: 1, 1, 1>}]} {
    %c0_i32 = arith.constant 0 : i32
    %0 = arith.cmpi eq, %arg1, %c0_i32 : i32
    %1 = arith.extui %0 : i1 to i32
    %c0_i32_0 = arith.constant 0 : i32
    %2 = arith.cmpi ne, %1, %c0_i32_0 : i32
    scf.if %2 {
      %cst_40 = arith.constant 0.000000e+00 : f32
      %80 = vector.broadcast %cst_40 : f32 to vector<16x1xf32>
      %c0_41 = arith.constant 0 : index
      %c0_42 = arith.constant 0 : index
      %81 = vector.load %arg13[%c0_41, %c0_42] : memref<16x1xf32, #tpu.memory_space<vmem>>, vector<16x1xf32>
      tpu.vector_store %arg13[%c0_41, %c0_42], %80 {strides = array<i32>} : memref<16x1xf32, #tpu.memory_space<vmem>>, vector<16x1xf32>,
      %82 = tpu.iota {dimensions = array<i32: 1>} : vector<1x128xi32>
      %c0_43 = arith.constant 0 : index
      %c0_44 = arith.constant 0 : index
      %83 = vector.load %arg11[%c0_43, %c0_44] : memref<1x128xi32, #tpu.memory_space<vmem>>, vector<1x128xi32>
      tpu.vector_store %arg11[%c0_43, %c0_44], %82 {strides = array<i32>} : memref<1x128xi32, #tpu.memory_space<vmem>>, vector<1x128xi32>,
      %84 = tpu.iota {dimensions = array<i32: 0>} : vector<16x1xi32>
      %c0_45 = arith.constant 0 : index
      %c0_46 = arith.constant 0 : index
      %85 = vector.load %arg12[%c0_45, %c0_46] : memref<16x1xi32, #tpu.memory_space<vmem>>, vector<16x1xi32>
      tpu.vector_store %arg12[%c0_45, %c0_46], %84 {strides = array<i32>} : memref<16x1xi32, #tpu.memory_space<vmem>>, vector<16x1xi32>,
    } else {
    }
    %c0 = arith.constant 0 : index
    %c0_1 = arith.constant 0 : index
    %3 = vector.load %arg2[%c0, %c0_1] : memref<16x128xbf16, #tpu.memory_space<vmem>>, vector<16x128xbf16>
    %c0_2 = arith.constant 0 : index
    %c0_3 = arith.constant 0 : index
    %4 = vector.load %arg4[%c0_2, %c0_3] : memref<128x128xbf16, #tpu.memory_space<vmem>>, vector<128x128xbf16>
    %cst = arith.constant dense<0.000000e+00> : vector<16x128xf32>
    %5 = tpu.matmul %3, %4, %cst {dimension_numbers = #tpu.dot_dimension_numbers<[1], [0], [0], [1], [0, 0, 1, 1], [], []>} : vector<16x128xbf16>, vector<128x128xbf16>, vector<16x128xf32> -> vector<16x128xf32>
    %c0_4 = arith.constant 0 : index
    %c0_5 = arith.constant 0 : index
    %6 = vector.load %arg5[%c0_4, %c0_5] : memref<1x128xf32, #tpu.memory_space<vmem>>, vector<1x128xf32>
    %7 = vector.broadcast %6 : vector<1x128xf32> to vector<16x128xf32>
    %8 = arith.addf %5, %7 : vector<16x128xf32>
    %cst_6 = arith.constant 0.000000e+00 : f32
    %9 = vector.broadcast %cst_6 : f32 to vector<16x128xf32>
    %10 = arith.maximumf %8, %9 : vector<16x128xf32>
    %11 = arith.truncf %10 : vector<16x128xf32> to vector<16x128xbf16>
    %c0_7 = arith.constant 0 : index
    %c0_8 = arith.constant 0 : index
    %12 = vector.load %arg6[%c0_7, %c0_8] : memref<128x256xbf16, #tpu.memory_space<vmem>>, vector<128x256xbf16>
    %cst_9 = arith.constant dense<0.000000e+00> : vector<16x256xf32>
    %13 = tpu.matmul %11, %12, %cst_9 {dimension_numbers = #tpu.dot_dimension_numbers<[1], [0], [0], [1], [0, 0, 1, 1], [], []>} : vector<16x128xbf16>, vector<128x256xbf16>, vector<16x256xf32> -> vector<16x256xf32>
    %c0_10 = arith.constant 0 : index
    %c0_11 = arith.constant 0 : index
    %14 = vector.load %arg7[%c0_10, %c0_11] : memref<1x256xf32, #tpu.memory_space<vmem>>, vector<1x256xf32>
    %15 = vector.broadcast %14 : vector<1x256xf32> to vector<16x256xf32>
    %16 = arith.addf %13, %15 : vector<16x256xf32>
    %17 = vector.extract_strided_slice %16 {offsets = [0, 0], sizes = [16, 128], strides = [1, 1]} : vector<16x256xf32> to vector<16x128xf32>
    %18 = vector.extract_strided_slice %16 {offsets = [0, 128], sizes = [16, 128], strides = [1, 1]} : vector<16x256xf32> to vector<16x128xf32>
    %cst_12 = arith.constant 0.000000e+00 : f32
    %19 = vector.broadcast %cst_12 : f32 to vector<16x128xf32>
    %20 = arith.maximumf %18, %19 : vector<16x128xf32>
    %21 = arith.truncf %20 : vector<16x128xf32> to vector<16x128xbf16>
    %c0_13 = arith.constant 0 : index
    %c0_14 = arith.constant 0 : index
    %22 = vector.load %arg8[%c0_13, %c0_14] : memref<128x128xbf16, #tpu.memory_space<vmem>>, vector<128x128xbf16>
    %cst_15 = arith.constant dense<0.000000e+00> : vector<16x128xf32>
    %23 = tpu.matmul %21, %22, %cst_15 {dimension_numbers = #tpu.dot_dimension_numbers<[1], [0], [0], [1], [0, 0, 1, 1], [], []>} : vector<16x128xbf16>, vector<128x128xbf16>, vector<16x128xf32> -> vector<16x128xf32>
    %c0_16 = arith.constant 0 : index
    %c0_17 = arith.constant 0 : index
    %24 = vector.load %arg9[%c0_16, %c0_17] : memref<1x128xf32, #tpu.memory_space<vmem>>, vector<1x128xf32>
    %25 = vector.broadcast %24 : vector<1x128xf32> to vector<16x128xf32>
    %26 = arith.addf %23, %25 : vector<16x128xf32>
    %c0_18 = arith.constant 0 : index
    %c0_19 = arith.constant 0 : index
    %27 = vector.load %arg3[%c0_18, %c0_19] : memref<16x2xi32, #tpu.memory_space<vmem>>, vector<16x2xi32>
    %28 = vector.extract_strided_slice %27 {offsets = [0, 0], sizes = [16, 1], strides = [1, 1]} : vector<16x2xi32> to vector<16x1xi32>
    %29 = vector.extract_strided_slice %27 {offsets = [0, 1], sizes = [16, 1], strides = [1, 1]} : vector<16x2xi32> to vector<16x1xi32>
    %c0_20 = arith.constant 0 : index
    %c0_21 = arith.constant 0 : index
    %30 = vector.load %arg11[%c0_20, %c0_21] : memref<1x128xi32, #tpu.memory_space<vmem>>, vector<1x128xi32>
    %cst_22 = arith.constant dense<0xFF800000> : vector<16xf32>
    %31 = vector.multi_reduction <maximumf>, %17, %cst_22 [1] : vector<16x128xf32> to vector<16xf32>
    %32 = vector.shape_cast %31 : vector<16xf32> to vector<16x1xf32>
    %33 = vector.broadcast %32 : vector<16x1xf32> to vector<16x128xf32>
    %34 = arith.subf %17, %33 : vector<16x128xf32>
    %35 = math.exp %34 : vector<16x128xf32>
    %cst_23 = arith.constant dense<0.000000e+00> : vector<16xf32>
    %36 = vector.multi_reduction <add>, %35, %cst_23 [1] : vector<16x128xf32> to vector<16xf32>
    %37 = vector.shape_cast %36 : vector<16xf32> to vector<16x1xf32>
    %38 = math.log %37 : vector<16x1xf32>
    %39 = vector.broadcast %30 : vector<1x128xi32> to vector<16x128xi32>
    %40 = vector.broadcast %28 : vector<16x1xi32> to vector<16x128xi32>
    %41 = arith.cmpi eq, %39, %40 : vector<16x128xi32>
    %cst_24 = arith.constant 0.000000e+00 : f32
    %42 = vector.broadcast %cst_24 : f32 to vector<16x128xf32>
    %43 = arith.select %41, %34, %42 : vector<16x128xi1>, vector<16x128xf32>
    %cst_25 = arith.constant dense<0.000000e+00> : vector<16xf32>
    %44 = vector.multi_reduction <add>, %43, %cst_25 [1] : vector<16x128xf32> to vector<16xf32>
    %45 = vector.shape_cast %44 : vector<16xf32> to vector<16x1xf32>
    %46 = arith.subf %38, %45 : vector<16x1xf32>
    %cst_26 = arith.constant dense<0xFF800000> : vector<16xf32>
    %47 = vector.multi_reduction <maximumf>, %26, %cst_26 [1] : vector<16x128xf32> to vector<16xf32>
    %48 = vector.shape_cast %47 : vector<16xf32> to vector<16x1xf32>
    %49 = vector.broadcast %48 : vector<16x1xf32> to vector<16x128xf32>
    %50 = arith.subf %26, %49 : vector<16x128xf32>
    %51 = math.exp %50 : vector<16x128xf32>
    %cst_27 = arith.constant dense<0.000000e+00> : vector<16xf32>
    %52 = vector.multi_reduction <add>, %51, %cst_27 [1] : vector<16x128xf32> to vector<16xf32>
    %53 = vector.shape_cast %52 : vector<16xf32> to vector<16x1xf32>
    %54 = math.log %53 : vector<16x1xf32>
    %55 = vector.broadcast %30 : vector<1x128xi32> to vector<16x128xi32>
    %56 = vector.broadcast %29 : vector<16x1xi32> to vector<16x128xi32>
    %57 = arith.cmpi eq, %55, %56 : vector<16x128xi32>
    %cst_28 = arith.constant 0.000000e+00 : f32
    %58 = vector.broadcast %cst_28 : f32 to vector<16x128xf32>
    %59 = arith.select %57, %50, %58 : vector<16x128xi1>, vector<16x128xf32>
    %cst_29 = arith.constant dense<0.000000e+00> : vector<16xf32>
    %60 = vector.multi_reduction <add>, %59, %cst_29 [1] : vector<16x128xf32> to vector<16xf32>
    %61 = vector.shape_cast %60 : vector<16xf32> to vector<16x1xf32>
    %62 = arith.subf %54, %61 : vector<16x1xf32>
    %63 = arith.addf %46, %62 : vector<16x1xf32>
    %c1_i32 = arith.constant 1 : i32
    %64 = arith.muli %arg0, %c1_i32 : i32
    %65 = arith.addi %64, %arg1 : i32
    %c16_i32 = arith.constant 16 : i32
    %66 = arith.muli %65, %c16_i32 : i32
    %c0_30 = arith.constant 0 : index
    %c0_31 = arith.constant 0 : index
    %67 = vector.load %arg12[%c0_30, %c0_31] : memref<16x1xi32, #tpu.memory_space<vmem>>, vector<16x1xi32>
    %68 = vector.broadcast %66 : i32 to vector<16x1xi32>
    %69 = arith.addi %67, %68 : vector<16x1xi32>
    %c16_i32_32 = arith.constant 16 : i32
    %70 = vector.broadcast %c16_i32_32 : i32 to vector<16x1xi32>
    %71 = arith.cmpi slt, %69, %70 : vector<16x1xi32>
    %c0_33 = arith.constant 0 : index
    %c0_34 = arith.constant 0 : index
    %72 = vector.load %arg13[%c0_33, %c0_34] : memref<16x1xf32, #tpu.memory_space<vmem>>, vector<16x1xf32>
    %cst_35 = arith.constant 0.000000e+00 : f32
    %73 = vector.broadcast %cst_35 : f32 to vector<16x1xf32>
    %74 = arith.select %71, %63, %73 : vector<16x1xi1>, vector<16x1xf32>
    %75 = arith.addf %72, %74 : vector<16x1xf32>
    %c0_36 = arith.constant 0 : index
    %c0_37 = arith.constant 0 : index
    %76 = vector.load %arg13[%c0_36, %c0_37] : memref<16x1xf32, #tpu.memory_space<vmem>>, vector<16x1xf32>
    tpu.vector_store %arg13[%c0_36, %c0_37], %75 {strides = array<i32>} : memref<16x1xf32, #tpu.memory_space<vmem>>, vector<16x1xf32>,
    %c0_i32_38 = arith.constant 0 : i32
    %77 = arith.cmpi eq, %arg1, %c0_i32_38 : i32
    %78 = arith.extui %77 : i1 to i32
    %c0_i32_39 = arith.constant 0 : i32
    %79 = arith.cmpi ne, %78, %c0_i32_39 : i32
    scf.if %79 {
      %c0_40 = arith.constant 0 : index
      %c0_41 = arith.constant 0 : index
      %80 = vector.load %arg13[%c0_40, %c0_41] : memref<16x1xf32, #tpu.memory_space<vmem>>, vector<16x1xf32>
      %81 = vector.shape_cast %80 : vector<16x1xf32> to vector<1x16x1xf32>
      %cst_42 = arith.constant dense<0.000000e+00> : vector<1xf32>
      %82 = vector.multi_reduction <add>, %81, %cst_42 [1, 2] : vector<1x16x1xf32> to vector<1xf32>
      %83 = vector.shape_cast %82 : vector<1xf32> to vector<1x1x1xf32>
      %84 = vector.extract %83[0, 0, 0] : f32 from vector<1x1x1xf32>
      %85 = vector.broadcast %84 : f32 to vector<1x1xf32>
      %cst_43 = arith.constant 6.250000e-02 : f32
      %86 = vector.broadcast %cst_43 : f32 to vector<1x1xf32>
      %87 = arith.mulf %85, %86 : vector<1x1xf32>
      %c0_44 = arith.constant 0 : index
      %c0_45 = arith.constant 0 : index
      %c0_46 = arith.constant 0 : index
      %88 = vector.load %arg10[%c0_44, %c0_45, %c0_46] : memref<1x1x1xf32, #tpu.memory_space<vmem>>, vector<1x1x1xf32>
      %89 = vector.shape_cast %88 : vector<1x1x1xf32> to vector<1x1xf32>
      %90 = vector.shape_cast %87 : vector<1x1xf32> to vector<1x1x1xf32>
      tpu.vector_store %arg10[%c0_44, %c0_45, %c0_46], %90 {strides = array<i32>} : memref<1x1x1xf32, #tpu.memory_space<vmem>>, vector<1x1x1xf32>,
    } else {
    }
    return
  }
  func.func @transform_0(%arg0: i32, %arg1: i32) -> (i32, i32) {
    %c1_i32 = arith.constant 1 : i32
    %0 = arith.muli %arg0, %c1_i32 : i32
    %1 = arith.addi %0, %arg1 : i32
    %c0_i32 = arith.constant 0 : i32
    %c0_i32_0 = arith.constant 0 : i32
    return %1, %c0_i32 : i32, i32
  }
  func.func @transform_1(%arg0: i32, %arg1: i32) -> (i32, i32) {
    %c1_i32 = arith.constant 1 : i32
    %0 = arith.muli %arg0, %c1_i32 : i32
    %1 = arith.addi %0, %arg1 : i32
    %c0_i32 = arith.constant 0 : i32
    %c0_i32_0 = arith.constant 0 : i32
    return %1, %c0_i32 : i32, i32
  }
  func.func @transform_2(%arg0: i32, %arg1: i32) -> (i32, i32) {
    %c0_i32 = arith.constant 0 : i32
    %c0_i32_0 = arith.constant 0 : i32
    %c0_i32_1 = arith.constant 0 : i32
    return %c0_i32, %c0_i32_0 : i32, i32
  }
  func.func @transform_3(%arg0: i32, %arg1: i32) -> (i32, i32) {
    %c0_i32 = arith.constant 0 : i32
    %c0_i32_0 = arith.constant 0 : i32
    %c0_i32_1 = arith.constant 0 : i32
    return %c0_i32, %c0_i32_0 : i32, i32
  }
  func.func @transform_4(%arg0: i32, %arg1: i32) -> (i32, i32) {
    %c0_i32 = arith.constant 0 : i32
    %c0_i32_0 = arith.constant 0 : i32
    %c0_i32_1 = arith.constant 0 : i32
    return %c0_i32, %c0_i32_0 : i32, i32
  }
  func.func @transform_5(%arg0: i32, %arg1: i32) -> (i32, i32) {
    %c0_i32 = arith.constant 0 : i32
    %c0_i32_0 = arith.constant 0 : i32
    %c0_i32_1 = arith.constant 0 : i32
    return %c0_i32, %c0_i32_0 : i32, i32
  }
  func.func @transform_6(%arg0: i32, %arg1: i32) -> (i32, i32) {
    %c0_i32 = arith.constant 0 : i32
    %c0_i32_0 = arith.constant 0 : i32
    %c0_i32_1 = arith.constant 0 : i32
    return %c0_i32, %c0_i32_0 : i32, i32
  }
  func.func @transform_7(%arg0: i32, %arg1: i32) -> (i32, i32) {
    %c0_i32 = arith.constant 0 : i32
    %c0_i32_0 = arith.constant 0 : i32
    %c0_i32_1 = arith.constant 0 : i32
    return %c0_i32, %c0_i32_0 : i32, i32
  }
  func.func @transform_8(%arg0: i32, %arg1: i32) -> (i32, i32, i32) {
    %c0_i32 = arith.constant 0 : i32
    %c0_i32_0 = arith.constant 0 : i32
    %c0_i32_1 = arith.constant 0 : i32
    return %arg0, %c0_i32, %c0_i32_0 : i32, i32, i32
  }
}

</mosaic_0001>

<bundles_post_ra>
// kernel: tpu_custom_call.1
= control target key start
LH: loop header
LB: loop body
LE: loop exit
PB: predicated region body
PF: predicated region fallthrough
CT: control target
= control target key end

     0   :  { %13 = vsyncpa [#allocation6], 0  ;;  %s1042_s0 = inlined_call_operand.vmem [shape: bf16[16,128], index: 0, kind: input, shape index: {}]   ;;  %s1043_s1 = inlined_call_operand.vmem [shape: s32[16,2], index: 1, kind: input, shape index: {}]   ;;  %s1044_s2 = inlined_call_operand.hbm [shape: bf16[128,128], index: 2, kind: input, shape index: {}]   ;;  %s1045_s3 = inlined_call_operand.vmem [shape: f32[1,128], index: 3, kind: input, shape index: {}]   ;;  %s1046_s4 = inlined_call_operand.hbm [shape: bf16[128,256], index: 4, kind: input, shape index: {}]   ;;  %s1047_s5 = inlined_call_operand.vmem [shape: f32[1,256], index: 5, kind: input, shape index: {}]   ;;  %s1048_s6 = inlined_call_operand.hbm [shape: bf16[128,128], index: 6, kind: input, shape index: {}]   ;;  %s1049_s7 = inlined_call_operand.vmem [shape: f32[1,128], index: 7, kind: input, shape index: {}]   ;;  %s1050_s8 = inlined_call_operand.hbm [shape: f32[1,1,1], index: 8, kind: output, shape index: {}]  }
   0x1   :  { %14 = vsyncpa [#allocation9], 0 }
   0x2   :  { %15 = vsyncpa [#allocation7], 0  ;;  %s919_s27 = smov [#allocation8]  }
   0x3   :  { %s55_s28 = sshll.u32 %s919_s27, 4  ;;  %s56_s28 = int_to_ptr.vmem [resolvable:$true] %s55_s28 }
   0x4   :  { %s841_s29 = scalar_lea.vmem %s56_s28, 2048  ;;  %p846_p1 = scmp.lt.s32.totalorder %s56_s28, %s56_s28 }
   0x5   :  { %p842_p0 = scmp.ne.s32.totalorder %s56_s28, %s841_s29  ;;  %p847_p2 = scmp.lt.s32.totalorder %s841_s29, %s841_s29 }
   0x7   :  { %p848_p3 = por %p847_p2, %p846_p1 }
   0x9   :  { %p849_p4 = pnand %p848_p3, %p842_p0 }
   0xb   :  { %852 = shalt.err (!%p849_p4)
}
   0xc   :  { %s920_s30 = smov 128   ;;  %s921_s9 = smov 8  }
   0xd   :  { %61 = dma.hbm_to_vmem [thread:$0]  %s1046_s4, 2048, %s56_s28, [#allocation9], %s920_s30, %s920_s30, %s921_s9  }
   0xe   :  { %s922_s12 = smov [#allocation5]  }
   0xf   :  { %s41_s13 = sshll.u32 %s922_s12, 4  ;;  %s42_s13 = int_to_ptr.vmem [resolvable:$true] %s41_s13 }
  0x10   :  { %s861_s14 = scalar_lea.vmem %s42_s13, 1024  ;;  %p866_p6 = scmp.lt.s32.totalorder %s42_s13, %s42_s13 }
  0x11   :  { %p862_p5 = scmp.ne.s32.totalorder %s42_s13, %s861_s14  ;;  %p867_p7 = scmp.lt.s32.totalorder %s861_s14, %s861_s14 }
  0x13   :  { %p868_p8 = por %p867_p7, %p866_p6 }
  0x15   :  { %p869_p9 = pnand %p868_p8, %p862_p5 }
  0x17   :  { %872 = shalt.err (!%p869_p9)
}
  0x18   :  { %s923_s15 = smov 64   ;;  %s924_s16 = smov 4  }
  0x19   :  { %47 = dma.hbm_to_vmem [thread:$0]  %s1044_s2, 1024, %s42_s13, [#allocation6], %s923_s15, %s923_s15, %s924_s16  }
  0x1a   :  { %s925_s19 = smov [#allocation10]  }
  0x1b   :  { %s69_s20 = sshll.u32 %s925_s19, 4  ;;  %s70_s20 = int_to_ptr.vmem [resolvable:$true] %s69_s20 }
  0x1c   :  { %s881_s4 = scalar_lea.vmem %s70_s20, 1024  ;;  %p886_p11 = scmp.lt.s32.totalorder %s70_s20, %s70_s20 }
  0x1d   :  { %p882_p10 = scmp.ne.s32.totalorder %s70_s20, %s881_s4  ;;  %p887_p12 = scmp.lt.s32.totalorder %s881_s4, %s881_s4 }
  0x1f   :  { %p888_p13 = por %p887_p12, %p886_p11 }
  0x21   :  { %p889_p0 = pnand %p888_p13, %p882_p10 }
  0x23   :  { %892 = shalt.err (!%p889_p0)
}
  0x24   :  { %75 = dma.hbm_to_vmem [thread:$0]  %s1048_s6, 1024, %s70_s20, [#allocation9], %s923_s15, %s923_s15, %s924_s16  }
  0x25   :  { %913 = dma.done.wait [#allocation6], 1024  }
  0x26   :  { %914 = vsyncadd [#allocation6], 4294966272 }
  0x27   :  { %915 = dma.done.wait [#allocation9], 3072  }
  0x28   :  { %916 = vsyncadd [#allocation9], 4294964224  ;;  %v926_v0 = vmov 0.0   ;;  %vm927_vm0 = vmmov 0   ;;  %v776_v1 = vld [vmem:[#allocation5 + $0x38] sm:$0xff]   ;;  %v777_v2 = vld [vmem:[#allocation5 + $0x30] sm:$0xff]   ;;  %v123_v28 = vlaneseq }
  0x29   :  { %718 = vmatprep.subr.bf16.mxu0 %v926_v0  ;;  %734 = vmatprep.mubr.msk.bf16.mxu0 %vm927_vm0, %v926_v0  ;;  %v778_v3 = vld [vmem:[#allocation5 + $0x28] sm:$0xff]   ;;  %v779_v4 = vld [vmem:[#allocation5 + $0x20] sm:$0xff]   ;;  %v785_v5 = vld [vmem:[#allocation8 + $0x74] ss:$8 sps:$4 sm:$0xff]   ;;  %v928_v26 = vmov 0   ;;  %vm120_vm5 = vcmask 7168  }
  0x2a   :  { %719 = vmatpush3.bf16.msra.mxu0 %v776_v1  ;;  %v787_v6 = vld [vmem:[#allocation8 + $0x70] ss:$8 sps:$4 sm:$0xff]   ;;  %362 = vmatprep.subr.bf16.mxu1 %v785_v5  ;;  %v788_v7 = vld [vmem:[#allocation8 + $0x64] ss:$8 sps:$4 sm:$0xff]   ;;  %v790_v8 = vld [vmem:[#allocation8 + $0x60] ss:$8 sps:$4 sm:$0xff]  }
  0x2b   :  { %720 = vmatprep.subr.bf16.mxu0 %v926_v0  ;;  %363 = vmatpush1.bf16.msra.mxu1 %v787_v6  ;;  %v791_v9 = vld [vmem:[#allocation8 + $0x54] ss:$8 sps:$4 sm:$0xff]   ;;  %v793_v12 = vld [vmem:[#allocation8 + $0x50] ss:$8 sps:$4 sm:$0xff]   ;;  %v794_v13 = vld [vmem:[#allocation8 + $0x44] ss:$8 sps:$4 sm:$0xff]  }
  0x2c   :  { %364 = vmatprep.subr.bf16.mxu1 %v788_v7  ;;  %v780_v10 = vld [vmem:[#allocation5 + $0x18] sm:$0xff]   ;;  %v781_v11 = vld [vmem:[#allocation5 + $0x10] sm:$0xff]   ;;  %v796_v14 = vld [vmem:[#allocation8 + $0x40] ss:$8 sps:$4 sm:$0xff]   ;;  %394 = vmatprep.mubr.bf16.mxu1 %v928_v26  ;;  %v124_v30 = vand.u32 127, %v123_v28  ;;  %v1014_v48 = vshrl.u32 %v123_v28, 7 }
  0x2d   :  { %v797_v15 = vld [vmem:[#allocation8 + $0x34] ss:$8 sps:$4 sm:$0xff]   ;;  %v782_v16 = vld [vmem:[#allocation5 + $0x8] sm:$0xff]   ;;  %v799_v17 = vld [vmem:[#allocation8 + $0x30] ss:$8 sps:$4 sm:$0xff]   ;;  %773 = vset.pattern.permute.xlu1 %v928_v26  ;;  %772 = vset.pattern.permute.xlu0 %v928_v26  ;;  %121 = vst.msk [vmem:[#allocation4] sm:$0xff] %vm120_vm5, %v926_v0 }
  0x2e   :  { %721 = vmatpush3.bf16.msra.mxu0 %v777_v2  ;;  %v800_v18 = vld [vmem:[#allocation8 + $0x24] ss:$8 sps:$4 sm:$0xff]   ;;  %v802_v21 = vld [vmem:[#allocation8 + $0x20] ss:$8 sps:$4 sm:$0xff]   ;;  %v803_v22 = vld [vmem:[#allocation8 + $0x14] ss:$8 sps:$4 sm:$0xff]  }
  0x2f   :  { %722 = vmatprep.subr.bf16.mxu0 %v926_v0  ;;  %365 = vmatpush1.bf16.msra.mxu1 %v790_v8  ;;  %v783_v19 = vld [vmem:[#allocation5] sm:$0xff]   ;;  %v805_v23 = vld [vmem:[#allocation8 + $0x10] ss:$8 sps:$4 sm:$0xff]   ;;  %125 = vst [vmem:[#allocation2] sm:$0x1] %v124_v30  ;;  %v811_v31 = vld [vmem:[#allocation10 + $0x28] sm:$0xff]  }
  0x30   :  { %366 = vmatprep.subr.bf16.mxu1 %v791_v9  ;;  %v784_v20 = vld [vmem:[%s1042_s0] sm:$0xff]   ;;  %v810_v29 = vld [vmem:[#allocation10 + $0x30] sm:$0xff]   ;;  %v815_v45 = vld [vmem:[#allocation10 + $0x8] sm:$0xff]   ;;  %v274_v49 = vsub.s32 0, %v1014_v48  ;;  %v278_v52 = vsub.s32 1, %v1014_v48  ;;  %129 = vst.msk [vmem:[#allocation3] sm:$0xff] %vm120_vm5, %v1014_v48 }
  0x31   :  { %v806_v24 = vld [vmem:[#allocation8 + $0x4] ss:$8 sps:$4 sm:$0xff]   ;;  %v808_v25 = vld [vmem:[#allocation8] ss:$8 sps:$4 sm:$0xff]   ;;  %v809_v27 = vld [vmem:[#allocation10 + $0x38] sm:$0xff]   ;;  %122 = vst.msk [vmem:[#allocation4 + $0x8] sm:$0xff] %vm120_vm5, %v926_v0 }
  0x32   :  { %723 = vmatpush3.bf16.msra.mxu0 %v778_v3  ;;  %v812_v32 = vld [vmem:[#allocation10 + $0x20] sm:$0xff]   ;;  %v813_v33 = vld [vmem:[#allocation10 + $0x18] sm:$0xff]   ;;  %v814_v44 = vld [vmem:[#allocation10 + $0x10] sm:$0xff]   ;;  %v929_v3 = vmov 1   ;;  %vm634_vm8 = vcmask 0  }
  0x33   :  { %724 = vmatprep.subr.bf16.mxu0 %v926_v0  ;;  %367 = vmatpush1.bf16.msra.mxu1 %v793_v12  ;;  %v664_v34 = vld [vmem:[%s1045_s3] ss:$0 sm:$0xff]  ;;  %v816_v46 = vld [vmem:[#allocation10] sm:$0xff]  }
  0x34   :  { %368 = vmatprep.subr.bf16.mxu1 %v794_v13  ;;  %v521_v47 = vld [vmem:[%s1043_s1 + $0x8] sm:$0xff]  ;;  %v270_v50 = vld [vmem:[%s1047_s5] sm:$0x3] }
  0x35   :  { %549 = vperm.xlu1 %773, %v521_v47   ;;  %v275_v51 = vrot.slane %v270_v50, %v274_v49  ;;  %v279_v55 = vrot.slane %v270_v50, %v278_v52  ;;  %v520_v2 = vld [vmem:[%s1043_s1] sm:$0xff]  ;;  %s930_s1 = smov [#allocation11]  }
  0x36   :  { %725 = vmatpush3.bf16.msra.mxu0 %v779_v4  ;;  %v690_v9 = vld [vmem:[%s1049_s7] ss:$0 sm:$0xff]  ;;  %s642_s7 = sshll.u32 %s930_s1, 4  ;;  %s643_s7 = int_to_ptr.vmem [resolvable:$true] %s642_s7 }
  0x37   :  { %726 = vmatprep.subr.bf16.mxu0 %v926_v0  ;;  %369 = vmatpush1.bf16.msra.mxu1 %v796_v14  ;;  %v699_v26 = vld [vmem:[#allocation2] ss:$0 sm:$0xff]  ;;  %s893_s9 = scalar_lea.vmem %s643_s7, 16  ;;  %s897_s10 = scalar_lea.vmem %s643_s7, 32 }
  0x38   :  { %370 = vmatprep.subr.bf16.mxu1 %v797_v15  ;;  %p894_p1 = scmp.ne.s32.totalorder %s643_s7, %s893_s9  ;;  %p898_p2 = scmp.lt.s32.totalorder %s643_s7, %s643_s7 }
  0x39   :  { %774 = vset.pattern.permute.xlu1 %v929_v3  ;;  %p899_p3 = scmp.lt.s32.totalorder %s897_s10, %s893_s9 }
  0x3a   :  { %727 = vmatpush3.bf16.msra.mxu0 %v780_v10 }
  0x3b   :  { %728 = vmatprep.subr.bf16.mxu0 %v926_v0  ;;  %371 = vmatpush1.bf16.msra.mxu1 %v799_v17  ;;  %p900_p4 = por %p899_p3, %p898_p2 }
  0x3c   :  { %372 = vmatprep.subr.bf16.mxu1 %v800_v18 }
  0x3d   :  { %p901_p5 = pnand %p900_p4, %p894_p1 }
  0x3e   :  { %729 = vmatpush3.bf16.msra.mxu0 %v781_v11 }
  0x3f   :  { %730 = vmatprep.subr.bf16.mxu0 %v926_v0  ;;  %373 = vmatpush1.bf16.msra.mxu1 %v802_v21 }
  0x40   :  { %374 = vmatprep.subr.bf16.mxu1 %v803_v22 }
  0x42   :  { %731 = vmatpush3.bf16.msra.mxu0 %v782_v16 }
  0x43   :  { %732 = vmatprep.subr.bf16.mxu0 %v926_v0  ;;  %375 = vmatpush1.bf16.msra.mxu1 %v805_v23 }
  0x44   :  { %376 = vmatprep.subr.bf16.mxu1 %v806_v24 }
  0x46   :  { %733 = vmatpush3.bf16.msra.mxu0 %v783_v19 }
  0x47   :  { %738 = vmatprep.subr.bf16.mxu0 %v926_v0  ;;  %377 = vmatpush1.bf16.msra.mxu1 %v808_v25 }
  0x49   :  { %735 = vmatmul.mubr.bf16.vlgmr.msra.gmra.mxu0 %v784_v20 }
  0x4a   :  { %754 = vmatprep.mubr.msk.bf16.mxu0 %vm927_vm0, %v926_v0  ;;  %739 = vmatpush3.bf16.msra.mxu0 %v809_v27 }
  0x4b   :  { %740 = vmatprep.subr.bf16.mxu0 %v926_v0 }
  0x4e   :  { %741 = vmatpush3.bf16.msra.mxu0 %v810_v29 }
  0x4f   :  { %742 = vmatprep.subr.bf16.mxu0 %v926_v0 }
  0x52   :  { %743 = vmatpush3.bf16.msra.mxu0 %v811_v31 }
  0x53   :  { %744 = vmatprep.subr.bf16.mxu0 %v926_v0 }
  0x56   :  { %745 = vmatpush3.bf16.msra.mxu0 %v812_v32 }
  0x57   :  { %746 = vmatprep.subr.bf16.mxu0 %v926_v0 }
  0x5a   :  { %747 = vmatpush3.bf16.msra.mxu0 %v813_v33 }
  0x5b   :  { %748 = vmatprep.subr.bf16.mxu0 %v926_v0 }
  0x5e   :  { %749 = vmatpush3.bf16.msra.mxu0 %v814_v44 }
  0x5f   :  { %750 = vmatprep.subr.bf16.mxu0 %v926_v0 }
  0x62   :  { %751 = vmatpush3.bf16.msra.mxu0 %v815_v45 }
  0x63   :  { %752 = vmatprep.subr.bf16.mxu0 %v926_v0 }
  0x66   :  { %753 = vmatpush3.bf16.msra.mxu0 %v816_v46 }
  0xb0   :  { %v550_v19 = vpop.permute.xlu1 %549 }
  0xb1   :  { %vm552_vm3 = vcmp.eq.s32.totalorder %v699_v26, %v550_v19 }
 0x109   :  { %v244_v35 = vpop.f32.mrf.mxu0 }
 0x10a   :  { %v245_v37 = vadd.f32 %v664_v34, %v244_v35 }
 0x10b   :  { %v736_v36 = vpop.f32.mrf.mxu0 }
 0x10c   :  { %v251_v41 = vmax.f32 %v245_v37, 0.0  ;;  %v128_v36 = vadd.s32 8, %v1014_v48 }
 0x10d   :  { %v247_v38 = vpop.f32.mrf.mxu0 }
 0x10e   :  { %v248_v39 = vadd.f32 %v664_v34, %v247_v38  ;;  %130 = vst.msk [vmem:[#allocation3 + $0x8] sm:$0xff] %vm120_vm5, %v128_v36 }
 0x10f   :  { %v737_v40 = vpop.f32.mrf.mxu0 }
 0x110   :  { %v252_v42 = vmax.f32 %v248_v39, 0.0 }
 0x112   :  { %v253_v43 = vpack.c.bf16 %v252_v42, %v251_v41 }
 0x114   :  { %395 = vmatmul.mubr.bf16.vlgmr.msra.gmra.mxu1 %v253_v43 }
 0x1d4   :  { %v396_v53 = vpop.f32.mrf.mxu1 }
 0x1d5   :  { %v397_v54 = vadd.f32 %v396_v53, %v275_v51  ;;  %v606_v53 = vld [vmem:[#allocation4] sm:$0xff] }
 0x1d6   :  { %v398_v56 = vpop.f32.mrf.mxu1 }
 0x1d7   :  { %523 = vmax.xlane.f32.xlu0 %v397_v54  ;;  %v399_v58 = vadd.f32 %v398_v56, %v279_v55  ;;  %v600_v56 = vld [vmem:[#allocation3 + $0x8] sm:$0xff] }
 0x1d8   :  { %v400_v57 = vpop.f32.mrf.mxu1  ;;  %vm605_vm7 = vcmp.lt.s32.totalorder %v600_v56, 16 }
 0x1d9   :  { %v401_v59 = vadd.f32 %v400_v57, %v275_v51  ;;  %v405_v62 = vmax.f32 %v399_v58, 0.0 }
 0x1da   :  { %v402_v60 = vpop.f32.mrf.mxu1 }
 0x1db   :  { %v403_v61 = vadd.f32 %v402_v60, %v279_v55  ;;  %525 = vmax.xlane.f32.xlu0 %v401_v59 }
 0x1dd   :  { %v406_v63 = vmax.f32 %v403_v61, 0.0 }
 0x1df   :  { %v407_v1 = vpack.c.bf16 %v406_v63, %v405_v62  ;;  %v607_v63 = vld [vmem:[#allocation4 + $0x8] sm:$0xff] }
 0x1e1   :  { %755 = vmatmul.mubr.bf16.vlgmr.msra.gmra.mxu0 %v407_v1 }
 0x1f1   :  { %546 = vperm.xlu0 %772, %v520_v2  }
 0x1f5   :  { %775 = vset.pattern.permute.xlu0 %v929_v3 }
 0x260   :  { %v524_v4 = vpop.xlane.xlu0 %523 }
 0x261   :  { %v527_v16 = vsub.f32 %v397_v54, %v524_v4 }
 0x263   :  { %v529_v17 = vmul.f32 1.442695, %v527_v16 }
 0x264   :  { %v526_v5 = vpop.xlane.xlu0 %525 }
 0x265   :  { %v528_v6 = vsub.f32 %v401_v59, %v526_v5 }
 0x267   :  { %v531_v7 = vmul.f32 1.442695, %v528_v6  ;;  %v554_v34 = vsel %vm552_vm3, %v528_v6, 0.0 }
 0x269   :  { %817 = vpow2.f32 %v531_v7 }
 0x26a   :  { %819 = vpow2.f32 %v529_v17 }
 0x26c   :  { %v547_v30 = vpop.permute.xlu0 %546 }
 0x26d   :  { %vm551_vm2 = vcmp.eq.s32.totalorder %v699_v26, %v547_v30 }
 0x26e   :  { %v553_v32 = vsel %vm551_vm2, %v527_v16, 0.0 }
 0x276   :  { %v818_v8 = vpop.eup %817 }
 0x277   :  { %535 = vadd.xlane.f32.xlu0 %v818_v8  ;;  %v820_v18 = vpop.eup %819 }
 0x2a1   :  { %v513_v10 = vpop.f32.mrf.mxu0 }
 0x2a2   :  { %v514_v11 = vadd.f32 %v690_v9, %v513_v10 }
 0x2a3   :  { %v756_v12 = vpop.f32.mrf.mxu0 }
 0x2a4   :  { %561 = vmax.xlane.f32.xlu1 %v514_v11 }
 0x2a5   :  { %v516_v13 = vpop.f32.mrf.mxu0 }
 0x2a6   :  { %v517_v14 = vadd.f32 %v690_v9, %v516_v13 }
 0x2a7   :  { %v757_v15 = vpop.f32.mrf.mxu0 }
 0x2a8   :  { %563 = vmax.xlane.f32.xlu1 %v517_v14 }
 0x2b9   :  { %580 = vperm.xlu1 %774, %v520_v2  }
 0x2bd   :  { %583 = vperm.xlu1 %774, %v521_v47   ;;  %v599_v47 = vld [vmem:[#allocation3] sm:$0xff] }
 0x2be   :  { %vm604_vm6 = vcmp.lt.s32.totalorder %v599_v47, 16 }
 0x2e1   :  { %533 = vadd.xlane.f32.xlu1 %v820_v18 }
 0x300   :  { %v536_v38 = vpop.xlane.xlu0 %535 }
 0x32d   :  { %v562_v20 = vpop.xlane.xlu1 %561 }
 0x32e   :  { %v565_v21 = vsub.f32 %v514_v11, %v562_v20 }
 0x330   :  { %v567_v22 = vmul.f32 1.442695, %v565_v21 }
 0x331   :  { %v564_v23 = vpop.xlane.xlu1 %563 }
 0x332   :  { %821 = vpow2.f32 %v567_v22  ;;  %v566_v24 = vsub.f32 %v517_v14, %v564_v23 }
 0x334   :  { %v569_v25 = vmul.f32 1.442695, %v566_v24 }
 0x335   :  { %v581_v27 = vpop.permute.xlu1 %580 }
 0x336   :  { %823 = vpow2.f32 %v569_v25  ;;  %vm585_vm1 = vcmp.eq.s32.totalorder %v699_v26, %v581_v27 }
 0x337   :  { %v587_v28 = vsel %vm585_vm1, %v565_v21, 0.0 }
 0x338   :  { %589 = vadd.xlane.f32.xlu0 %v587_v28 }
 0x339   :  { %v584_v33 = vpop.permute.xlu1 %583 }
 0x33a   :  { %vm586_vm4 = vcmp.eq.s32.totalorder %v699_v26, %v584_v33 }
 0x33b   :  { %v588_v35 = vsel %vm586_vm4, %v566_v24, 0.0 }
 0x33f   :  { %v822_v29 = vpop.eup %821 }
 0x340   :  { %571 = vadd.xlane.f32.xlu1 %v822_v29 }
 0x343   :  { %v824_v31 = vpop.eup %823 }
 0x344   :  { %573 = vadd.xlane.f32.xlu1 %v824_v31 }
 0x348   :  { %555 = vadd.xlane.f32.xlu1 %v553_v32 }
 0x34c   :  { %557 = vadd.xlane.f32.xlu1 %v554_v34 }
 0x350   :  { %591 = vadd.xlane.f32.xlu1 %v588_v35 }
 0x36a   :  { %v534_v37 = vpop.xlane.xlu1 %533 }
 0x36b   :  { %825 = vlog2.f32 %v534_v37 }
 0x378   :  { %v826_v42 = vpop.eup %825 }
 0x379   :  { %v538_v46 = vmul.f32 0.6931472, %v826_v42 }
 0x3c1   :  { %v590_v49 = vpop.xlane.xlu0 %589 }
 0x3c9   :  { %v572_v39 = vpop.xlane.xlu1 %571 }
 0x3ca   :  { %827 = vlog2.f32 %v572_v39 }
 0x3cb   :  { %829 = vlog2.f32 %v536_v38 }
 0x3cd   :  { %v574_v40 = vpop.xlane.xlu1 %573 }
 0x3ce   :  { %831 = vlog2.f32 %v574_v40 }
 0x3d1   :  { %v556_v41 = vpop.xlane.xlu1 %555 }
 0x3d2   :  { %v559_v50 = vsub.f32 %v538_v46, %v556_v41 }
 0x3d5   :  { %v558_v44 = vpop.xlane.xlu1 %557 }
 0x3d7   :  { %v828_v43 = vpop.eup %827 }
 0x3d8   :  { %v576_v45 = vmul.f32 0.6931472, %v828_v43  ;;  %v830_v48 = vpop.eup %829 }
 0x3d9   :  { %v540_v54 = vmul.f32 0.6931472, %v830_v48  ;;  %v592_v57 = vpop.xlane.xlu1 %591 }
 0x3da   :  { %v593_v0 = vsub.f32 %v576_v45, %v590_v49 }
 0x3db   :  { %v832_v51 = vpop.eup %831  ;;  %v560_v59 = vsub.f32 %v540_v54, %v558_v44 }
 0x3dc   :  { %v595_v52 = vadd.f32 %v593_v0, %v559_v50  ;;  %v578_v55 = vmul.f32 0.6931472, %v832_v51 }
 0x3de   :  { %v608_v58 = vsel %vm604_vm6, %v595_v52, 0.0  ;;  %v594_v60 = vsub.f32 %v578_v55, %v592_v57 }
 0x3df   :  { %v610_v61 = vadd.f32 %v608_v58, %v606_v53 }
 0x3e0   :  { %v596_v62 = vadd.f32 %v594_v60, %v560_v59 }
 0x3e1   :  { %613 = vst.msk [vmem:[#allocation4] sm:$0xff] %vm120_vm5, %v610_v61 }
 0x3e2   :  { %v609_v1 = vsel %vm605_vm7, %v596_v62, 0.0 }
 0x3e3   :  { %v611_v2 = vadd.f32 %v609_v1, %v607_v63 }
 0x3e5   :  { %614 = vst.msk [vmem:[#allocation4 + $0x8] sm:$0xff] %vm120_vm5, %v611_v2 }
 0x3e8   :  { %v618_v3 = vld [vmem:[#allocation4] sm:$0xff] }
 0x3e9   :  { %v620_v5 = vsel %vm120_vm5, %v618_v3, 0.0 }
 0x3ec   :  { %v619_v4 = vld [vmem:[#allocation4 + $0x8] sm:$0xff] }
 0x3ed   :  { %v621_v6 = vsel %vm120_vm5, %v619_v4, 0.0 }
 0x3ee   :  { %v622_v7 = vadd.f32 %v621_v6, %v620_v5 }
 0x3f0   :  { %623 = vadd.xlane.f32.xlu0 %v622_v7 }
 0x479   :  { %v624_v8 = vpop.xlane.xlu0 %623 }
 0x47a   :  { %v625_v9 = vrot.slane %v624_v8, 4 }
 0x47c   :  { %v626_v10 = vadd.f32 %v625_v9, %v624_v8 }
 0x47e   :  { %v627_v11 = vrot.slane %v626_v10, 2 }
 0x480   :  { %v628_v12 = vadd.f32 %v627_v11, %v626_v10 }
 0x482   :  { %v629_v13 = vrot.slane %v628_v12, 1 }
 0x484   :  { %v630_v14 = vadd.f32 %v629_v13, %v628_v12 }
 0x486   :  { %758 = vpush %v630_v14 }
 0x4b7   :  { %s759_s30 = spop %758 }
 0x4b8   :  { %v632_v15 = vstv %s759_s30 }
 0x4b9   :  { %v633_v16 = vmul.f32 0.0625, %v632_v15 }
 0x4bb   :  { %635 = vst.msk [vmem:[#allocation11] sm:$0x1] %vm634_vm8, %v633_v16 }
 0x4bc   :  { %904 = shalt.err (!%p901_p5)
}
 0x4bd   :  { %645 = dma.vmem_to_hbm [thread:$0]  %s643_s7, 16, %s1050_s8, [#allocation7]  }
 0x4be   :  { %917 = dma.done.wait [#allocation7], 16  }
 0x4bf   :  { %918 = vsyncadd [#allocation7], 4294967280 }
 0x4c0   :  { %649 = vsyncpa [#allocation6], 1 }
 0x4c1   :  { %650 = vsyncpa [#allocation9], 1 }
 0x4c2   :  { %651 = vsyncpa [#allocation7], 1 }

// kernel: tpu_custom_call.1
= control target key start
LH: loop header
LB: loop body
LE: loop exit
PB: predicated region body
PF: predicated region fallthrough
CT: control target
= control target key end

     0   :  { %13 = vsyncpa [#allocation6], 0  ;;  %s1042_s0 = inlined_call_operand.vmem [shape: bf16[16,128], index: 0, kind: input, shape index: {}]   ;;  %s1043_s1 = inlined_call_operand.vmem [shape: s32[16,2], index: 1, kind: input, shape index: {}]   ;;  %s1044_s2 = inlined_call_operand.hbm [shape: bf16[128,128], index: 2, kind: input, shape index: {}]   ;;  %s1045_s3 = inlined_call_operand.vmem [shape: f32[1,128], index: 3, kind: input, shape index: {}]   ;;  %s1046_s4 = inlined_call_operand.hbm [shape: bf16[128,256], index: 4, kind: input, shape index: {}]   ;;  %s1047_s5 = inlined_call_operand.vmem [shape: f32[1,256], index: 5, kind: input, shape index: {}]   ;;  %s1048_s6 = inlined_call_operand.hbm [shape: bf16[128,128], index: 6, kind: input, shape index: {}]   ;;  %s1049_s7 = inlined_call_operand.vmem [shape: f32[1,128], index: 7, kind: input, shape index: {}]   ;;  %s1050_s8 = inlined_call_operand.hbm [shape: f32[1,1,1], index: 8, kind: output, shape index: {}]  }
   0x1   :  { %14 = vsyncpa [#allocation9], 0 }
   0x2   :  { %15 = vsyncpa [#allocation7], 0  ;;  %s919_s27 = smov [#allocation8]  }
   0x3   :  { %s55_s28 = sshll.u32 %s919_s27, 4  ;;  %s56_s28 = int_to_ptr.vmem [resolvable:$true] %s55_s28 }
   0x4   :  { %s841_s29 = scalar_lea.vmem %s56_s28, 2048  ;;  %p846_p1 = scmp.lt.s32.totalorder %s56_s28, %s56_s28 }
   0x5   :  { %p842_p0 = scmp.ne.s32.totalorder %s56_s28, %s841_s29  ;;  %p847_p2 = scmp.lt.s32.totalorder %s841_s29, %s841_s29 }
   0x7   :  { %p848_p3 = por %p847_p2, %p846_p1 }
   0x9   :  { %p849_p4 = pnand %p848_p3, %p842_p0 }
   0xb   :  { %852 = shalt.err (!%p849_p4)
}
   0xc   :  { %s920_s30 = smov 128   ;;  %s921_s9 = smov 8  }
   0xd   :  { %61 = dma.hbm_to_vmem [thread:$0]  %s1046_s4, 2048, %s56_s28, [#allocation9], %s920_s30, %s920_s30, %s921_s9  }
   0xe   :  { %s922_s12 = smov [#allocation5]  }
   0xf   :  { %s41_s13 = sshll.u32 %s922_s12, 4  ;;  %s42_s13 = int_to_ptr.vmem [resolvable:$true] %s41_s13 }
  0x10   :  { %s861_s14 = scalar_lea.vmem %s42_s13, 1024  ;;  %p866_p6 = scmp.lt.s32.totalorder %s42_s13, %s42_s13 }
  0x11   :  { %p862_p5 = scmp.ne.s32.totalorder %s42_s13, %s861_s14  ;;  %p867_p7 = scmp.lt.s32.totalorder %s861_s14, %s861_s14 }
  0x13   :  { %p868_p8 = por %p867_p7, %p866_p6 }
  0x15   :  { %p869_p9 = pnand %p868_p8, %p862_p5 }
  0x17   :  { %872 = shalt.err (!%p869_p9)
}
  0x18   :  { %s923_s15 = smov 64   ;;  %s924_s16 = smov 4  }
  0x19   :  { %47 = dma.hbm_to_vmem [thread:$0]  %s1044_s2, 1024, %s42_s13, [#allocation6], %s923_s15, %s923_s15, %s924_s16  }
  0x1a   :  { %s925_s19 = smov [#allocation10]  }
  0x1b   :  { %s69_s20 = sshll.u32 %s925_s19, 4  ;;  %s70_s20 = int_to_ptr.vmem [resolvable:$true] %s69_s20 }
  0x1c   :  { %s881_s4 = scalar_lea.vmem %s70_s20, 1024  ;;  %p886_p11 = scmp.lt.s32.totalorder %s70_s20, %s70_s20 }
  0x1d   :  { %p882_p10 = scmp.ne.s32.totalorder %s70_s20, %s881_s4  ;;  %p887_p12 = scmp.lt.s32.totalorder %s881_s4, %s881_s4 }
  0x1f   :  { %p888_p13 = por %p887_p12, %p886_p11 }
  0x21   :  { %p889_p0 = pnand %p888_p13, %p882_p10 }
  0x23   :  { %892 = shalt.err (!%p889_p0)
}
  0x24   :  { %75 = dma.hbm_to_vmem [thread:$0]  %s1048_s6, 1024, %s70_s20, [#allocation9], %s923_s15, %s923_s15, %s924_s16  }
  0x25   :  { %913 = dma.done.wait [#allocation6], 1024  }
  0x26   :  { %914 = vsyncadd [#allocation6], 4294966272 }
  0x27   :  { %915 = dma.done.wait [#allocation9], 3072  }
  0x28   :  { %916 = vsyncadd [#allocation9], 4294964224  ;;  %v926_v0 = vmov 0.0   ;;  %vm927_vm0 = vmmov 0   ;;  %v776_v1 = vld [vmem:[#allocation5 + $0x38] sm:$0xff]   ;;  %v777_v2 = vld [vmem:[#allocation5 + $0x30] sm:$0xff]   ;;  %v123_v28 = vlaneseq }
  0x29   :  { %718 = vmatprep.subr.bf16.mxu0 %v926_v0  ;;  %734 = vmatprep.mubr.msk.bf16.mxu0 %vm927_vm0, %v926_v0  ;;  %v778_v3 = vld [vmem:[#allocation5 + $0x28] sm:$0xff]   ;;  %v779_v4 = vld [vmem:[#allocation5 + $0x20] sm:$0xff]   ;;  %v785_v5 = vld [vmem:[#allocation8 + $0x74] ss:$8 sps:$4 sm:$0xff]   ;;  %v928_v26 = vmov 0   ;;  %vm120_vm5 = vcmask 7168  }
  0x2a   :  { %719 = vmatpush3.bf16.msra.mxu0 %v776_v1  ;;  %v787_v6 = vld [vmem:[#allocation8 + $0x70] ss:$8 sps:$4 sm:$0xff]   ;;  %362 = vmatprep.subr.bf16.mxu1 %v785_v5  ;;  %v788_v7 = vld [vmem:[#allocation8 + $0x64] ss:$8 sps:$4 sm:$0xff]   ;;  %v790_v8 = vld [vmem:[#allocation8 + $0x60] ss:$8 sps:$4 sm:$0xff]  }
  0x2b   :  { %720 = vmatprep.subr.bf16.mxu0 %v926_v0  ;;  %363 = vmatpush1.bf16.msra.mxu1 %v787_v6  ;;  %v791_v9 = vld [vmem:[#allocation8 + $0x54] ss:$8 sps:$4 sm:$0xff]   ;;  %v793_v12 = vld [vmem:[#allocation8 + $0x50] ss:$8 sps:$4 sm:$0xff]   ;;  %v794_v13 = vld [vmem:[#allocation8 + $0x44] ss:$8 sps:$4 sm:$0xff]  }
  0x2c   :  { %364 = vmatprep.subr.bf16.mxu1 %v788_v7  ;;  %v780_v10 = vld [vmem:[#allocation5 + $0x18] sm:$0xff]   ;;  %v781_v11 = vld [vmem:[#allocation5 + $0x10] sm:$0xff]   ;;  %v796_v14 = vld [vmem:[#allocation8 + $0x40] ss:$8 sps:$4 sm:$0xff]   ;;  %394 = vmatprep.mubr.bf16.mxu1 %v928_v26  ;;  %v124_v30 = vand.u32 127, %v123_v28  ;;  %v1014_v48 = vshrl.u32 %v123_v28, 7 }
  0x2d   :  { %v797_v15 = vld [vmem:[#allocation8 + $0x34] ss:$8 sps:$4 sm:$0xff]   ;;  %v782_v16 = vld [vmem:[#allocation5 + $0x8] sm:$0xff]   ;;  %v799_v17 = vld [vmem:[#allocation8 + $0x30] ss:$8 sps:$4 sm:$0xff]   ;;  %773 = vset.pattern.permute.xlu1 %v928_v26  ;;  %772 = vset.pattern.permute.xlu0 %v928_v26  ;;  %121 = vst.msk [vmem:[#allocation4] sm:$0xff] %vm120_vm5, %v926_v0 }
  0x2e   :  { %721 = vmatpush3.bf16.msra.mxu0 %v777_v2  ;;  %v800_v18 = vld [vmem:[#allocation8 + $0x24] ss:$8 sps:$4 sm:$0xff]   ;;  %v802_v21 = vld [vmem:[#allocation8 + $0x20] ss:$8 sps:$4 sm:$0xff]   ;;  %v803_v22 = vld [vmem:[#allocation8 + $0x14] ss:$8 sps:$4 sm:$0xff]  }
  0x2f   :  { %722 = vmatprep.subr.bf16.mxu0 %v926_v0  ;;  %365 = vmatpush1.bf16.msra.mxu1 %v790_v8  ;;  %v783_v19 = vld [vmem:[#allocation5] sm:$0xff]   ;;  %v805_v23 = vld [vmem:[#allocation8 + $0x10] ss:$8 sps:$4 sm:$0xff]   ;;  %125 = vst [vmem:[#allocation2] sm:$0x1] %v124_v30  ;;  %v811_v31 = vld [vmem:[#allocation10 + $0x28] sm:$0xff]  }
  0x30   :  { %366 = vmatprep.subr.bf16.mxu1 %v791_v9  ;;  %v784_v20 = vld [vmem:[%s1042_s0] sm:$0xff]   ;;  %v810_v29 = vld [vmem:[#allocation10 + $0x30] sm:$0xff]   ;;  %v815_v45 = vld [vmem:[#allocation10 + $0x8] sm:$0xff]   ;;  %v274_v49 = vsub.s32 0, %v1014_v48  ;;  %v278_v52 = vsub.s32 1, %v1014_v48  ;;  %129 = vst.msk [vmem:[#allocation3] sm:$0xff] %vm120_vm5, %v1014_v48 }
  0x31   :  { %v806_v24 = vld [vmem:[#allocation8 + $0x4] ss:$8 sps:$4 sm:$0xff]   ;;  %v808_v25 = vld [vmem:[#allocation8] ss:$8 sps:$4 sm:$0xff]   ;;  %v809_v27 = vld [vmem:[#allocation10 + $0x38] sm:$0xff]   ;;  %122 = vst.msk [vmem:[#allocation4 + $0x8] sm:$0xff] %vm120_vm5, %v926_v0 }
  0x32   :  { %723 = vmatpush3.bf16.msra.mxu0 %v778_v3  ;;  %v812_v32 = vld [vmem:[#allocation10 + $0x20] sm:$0xff]   ;;  %v813_v33 = vld [vmem:[#allocation10 + $0x18] sm:$0xff]   ;;  %v814_v44 = vld [vmem:[#allocation10 + $0x10] sm:$0xff]   ;;  %v929_v3 = vmov 1   ;;  %vm634_vm8 = vcmask 0  }
  0x33   :  { %724 = vmatprep.subr.bf16.mxu0 %v926_v0  ;;  %367 = vmatpush1.bf16.msra.mxu1 %v793_v12  ;;  %v664_v34 = vld [vmem:[%s1045_s3] ss:$0 sm:$0xff]  ;;  %v816_v46 = vld [vmem:[#allocation10] sm:$0xff]  }
  0x34   :  { %368 = vmatprep.subr.bf16.mxu1 %v794_v13  ;;  %v521_v47 = vld [vmem:[%s1043_s1 + $0x8] sm:$0xff]  ;;  %v270_v50 = vld [vmem:[%s1047_s5] sm:$0x3] }
  0x35   :  { %549 = vperm.xlu1 %773, %v521_v47   ;;  %v275_v51 = vrot.slane %v270_v50, %v274_v49  ;;  %v279_v55 = vrot.slane %v270_v50, %v278_v52  ;;  %v520_v2 = vld [vmem:[%s1043_s1] sm:$0xff]  ;;  %s930_s1 = smov [#allocation11]  }
  0x36   :  { %725 = vmatpush3.bf16.msra.mxu0 %v779_v4  ;;  %v690_v9 = vld [vmem:[%s1049_s7] ss:$0 sm:$0xff]  ;;  %s642_s7 = sshll.u32 %s930_s1, 4  ;;  %s643_s7 = int_to_ptr.vmem [resolvable:$true] %s642_s7 }
  0x37   :  { %726 = vmatprep.subr.bf16.mxu0 %v926_v0  ;;  %369 = vmatpush1.bf16.msra.mxu1 %v796_v14  ;;  %v699_v26 = vld [vmem:[#allocation2] ss:$0 sm:$0xff]  ;;  %s893_s9 = scalar_lea.vmem %s643_s7, 16  ;;  %s897_s10 = scalar_lea.vmem %s643_s7, 32 }
  0x38   :  { %370 = vmatprep.subr.bf16.mxu1 %v797_v15  ;;  %p894_p1 = scmp.ne.s32.totalorder %s643_s7, %s893_s9  ;;  %p898_p2 = scmp.lt.s32.totalorder %s643_s7, %s643_s7 }
  0x39   :  { %774 = vset.pattern.permute.xlu1 %v929_v3  ;;  %p899_p3 = scmp.lt.s32.totalorder %s897_s10, %s893_s9 }
  0x3a   :  { %727 = vmatpush3.bf16.msra.mxu0 %v780_v10 }
  0x3b   :  { %728 = vmatprep.subr.bf16.mxu0 %v926_v0  ;;  %371 = vmatpush1.bf16.msra.mxu1 %v799_v17  ;;  %p900_p4 = por %p899_p3, %p898_p2 }
  0x3c   :  { %372 = vmatprep.subr.bf16.mxu1 %v800_v18 }
  0x3d   :  { %p901_p5 = pnand %p900_p4, %p894_p1 }
  0x3e   :  { %729 = vmatpush3.bf16.msra.mxu0 %v781_v11 }
  0x3f   :  { %730 = vmatprep.subr.bf16.mxu0 %v926_v0  ;;  %373 = vmatpush1.bf16.msra.mxu1 %v802_v21 }
  0x40   :  { %374 = vmatprep.subr.bf16.mxu1 %v803_v22 }
  0x42   :  { %731 = vmatpush3.bf16.msra.mxu0 %v782_v16 }
  0x43   :  { %732 = vmatprep.subr.bf16.mxu0 %v926_v0  ;;  %375 = vmatpush1.bf16.msra.mxu1 %v805_v23 }
  0x44   :  { %376 = vmatprep.subr.bf16.mxu1 %v806_v24 }
  0x46   :  { %733 = vmatpush3.bf16.msra.mxu0 %v783_v19 }
  0x47   :  { %738 = vmatprep.subr.bf16.mxu0 %v926_v0  ;;  %377 = vmatpush1.bf16.msra.mxu1 %v808_v25 }
  0x49   :  { %735 = vmatmul.mubr.bf16.vlgmr.msra.gmra.mxu0 %v784_v20 }
  0x4a   :  { %754 = vmatprep.mubr.msk.bf16.mxu0 %vm927_vm0, %v926_v0  ;;  %739 = vmatpush3.bf16.msra.mxu0 %v809_v27 }
  0x4b   :  { %740 = vmatprep.subr.bf16.mxu0 %v926_v0 }
  0x4e   :  { %741 = vmatpush3.bf16.msra.mxu0 %v810_v29 }
  0x4f   :  { %742 = vmatprep.subr.bf16.mxu0 %v926_v0 }
  0x52   :  { %743 = vmatpush3.bf16.msra.mxu0 %v811_v31 }
  0x53   :  { %744 = vmatprep.subr.bf16.mxu0 %v926_v0 }
  0x56   :  { %745 = vmatpush3.bf16.msra.mxu0 %v812_v32 }
  0x57   :  { %746 = vmatprep.subr.bf16.mxu0 %v926_v0 }
  0x5a   :  { %747 = vmatpush3.bf16.msra.mxu0 %v813_v33 }
  0x5b   :  { %748 = vmatprep.subr.bf16.mxu0 %v926_v0 }
  0x5e   :  { %749 = vmatpush3.bf16.msra.mxu0 %v814_v44 }
  0x5f   :  { %750 = vmatprep.subr.bf16.mxu0 %v926_v0 }
  0x62   :  { %751 = vmatpush3.bf16.msra.mxu0 %v815_v45 }
  0x63   :  { %752 = vmatprep.subr.bf16.mxu0 %v926_v0 }
  0x66   :  { %753 = vmatpush3.bf16.msra.mxu0 %v816_v46 }
  0xb0   :  { %v550_v19 = vpop.permute.xlu1 %549 }
  0xb1   :  { %vm552_vm3 = vcmp.eq.s32.totalorder %v699_v26, %v550_v19 }
 0x109   :  { %v244_v35 = vpop.f32.mrf.mxu0 }
 0x10a   :  { %v245_v37 = vadd.f32 %v664_v34, %v244_v35 }
 0x10b   :  { %v736_v36 = vpop.f32.mrf.mxu0 }
 0x10c   :  { %v251_v41 = vmax.f32 %v245_v37, 0.0  ;;  %v128_v36 = vadd.s32 8, %v1014_v48 }
 0x10d   :  { %v247_v38 = vpop.f32.mrf.mxu0 }
 0x10e   :  { %v248_v39 = vadd.f32 %v664_v34, %v247_v38  ;;  %130 = vst.msk [vmem:[#allocation3 + $0x8] sm:$0xff] %vm120_vm5, %v128_v36 }
 0x10f   :  { %v737_v40 = vpop.f32.mrf.mxu0 }
 0x110   :  { %v252_v42 = vmax.f32 %v248_v39, 0.0 }
 0x112   :  { %v253_v43 = vpack.c.bf16 %v252_v42, %v251_v41 }
 0x114   :  { %395 = vmatmul.mubr.bf16.vlgmr.msra.gmra.mxu1 %v253_v43 }
 0x1d4   :  { %v396_v53 = vpop.f32.mrf.mxu1 }
 0x1d5   :  { %v397_v54 = vadd.f32 %v396_v53, %v275_v51  ;;  %v606_v53 = vld [vmem:[#allocation4] sm:$0xff] }
 0x1d6   :  { %v398_v56 = vpop.f32.mrf.mxu1 }
 0x1d7   :  { %523 = vmax.xlane.f32.xlu0 %v397_v54  ;;  %v399_v58 = vadd.f32 %v398_v56, %v279_v55  ;;  %v600_v56 = vld [vmem:[#allocation3 + $0x8] sm:$0xff] }
 0x1d8   :  { %v400_v57 = vpop.f32.mrf.mxu1  ;;  %vm605_vm7 = vcmp.lt.s32.totalorder %v600_v56, 16 }
 0x1d9   :  { %v401_v59 = vadd.f32 %v400_v57, %v275_v51  ;;  %v405_v62 = vmax.f32 %v399_v58, 0.0 }
 0x1da   :  { %v402_v60 = vpop.f32.mrf.mxu1 }
 0x1db   :  { %v403_v61 = vadd.f32 %v402_v60, %v279_v55  ;;  %525 = vmax.xlane.f32.xlu0 %v401_v59 }
 0x1dd   :  { %v406_v63 = vmax.f32 %v403_v61, 0.0 }
 0x1df   :  { %v407_v1 = vpack.c.bf16 %v406_v63, %v405_v62  ;;  %v607_v63 = vld [vmem:[#allocation4 + $0x8] sm:$0xff] }
 0x1e1   :  { %755 = vmatmul.mubr.bf16.vlgmr.msra.gmra.mxu0 %v407_v1 }
 0x1f1   :  { %546 = vperm.xlu0 %772, %v520_v2  }
 0x1f5   :  { %775 = vset.pattern.permute.xlu0 %v929_v3 }
 0x260   :  { %v524_v4 = vpop.xlane.xlu0 %523 }
 0x261   :  { %v527_v16 = vsub.f32 %v397_v54, %v524_v4 }
 0x263   :  { %v529_v17 = vmul.f32 1.442695, %v527_v16 }
 0x264   :  { %v526_v5 = vpop.xlane.xlu0 %525 }
 0x265   :  { %v528_v6 = vsub.f32 %v401_v59, %v526_v5 }
 0x267   :  { %v531_v7 = vmul.f32 1.442695, %v528_v6  ;;  %v554_v34 = vsel %vm552_vm3, %v528_v6, 0.0 }
 0x269   :  { %817 = vpow2.f32 %v531_v7 }
 0x26a   :  { %819 = vpow2.f32 %v529_v17 }
 0x26c   :  { %v547_v30 = vpop.permute.xlu0 %546 }
 0x26d   :  { %vm551_vm2 = vcmp.eq.s32.totalorder %v699_v26, %v547_v30 }
 0x26e   :  { %v553_v32 = vsel %vm551_vm2, %v527_v16, 0.0 }
 0x276   :  { %v818_v8 = vpop.eup %817 }
 0x277   :  { %535 = vadd.xlane.f32.xlu0 %v818_v8  ;;  %v820_v18 = vpop.eup %819 }
 0x2a1   :  { %v513_v10 = vpop.f32.mrf.mxu0 }
 0x2a2   :  { %v514_v11 = vadd.f32 %v690_v9, %v513_v10 }
 0x2a3   :  { %v756_v12 = vpop.f32.mrf.mxu0 }
 0x2a4   :  { %561 = vmax.xlane.f32.xlu1 %v514_v11 }
 0x2a5   :  { %v516_v13 = vpop.f32.mrf.mxu0 }
 0x2a6   :  { %v517_v14 = vadd.f32 %v690_v9, %v516_v13 }
 0x2a7   :  { %v757_v15 = vpop.f32.mrf.mxu0 }
 0x2a8   :  { %563 = vmax.xlane.f32.xlu1 %v517_v14 }
 0x2b9   :  { %580 = vperm.xlu1 %774, %v520_v2  }
 0x2bd   :  { %583 = vperm.xlu1 %774, %v521_v47   ;;  %v599_v47 = vld [vmem:[#allocation3] sm:$0xff] }
 0x2be   :  { %vm604_vm6 = vcmp.lt.s32.totalorder %v599_v47, 16 }
 0x2e1   :  { %533 = vadd.xlane.f32.xlu1 %v820_v18 }
 0x300   :  { %v536_v38 = vpop.xlane.xlu0 %535 }
 0x32d   :  { %v562_v20 = vpop.xlane.xlu1 %561 }
 0x32e   :  { %v565_v21 = vsub.f32 %v514_v11, %v562_v20 }
 0x330   :  { %v567_v22 = vmul.f32 1.442695, %v565_v21 }
 0x331   :  { %v564_v23 = vpop.xlane.xlu1 %563 }
 0x332   :  { %821 = vpow2.f32 %v567_v22  ;;  %v566_v24 = vsub.f32 %v517_v14, %v564_v23 }
 0x334   :  { %v569_v25 = vmul.f32 1.442695, %v566_v24 }
 0x335   :  { %v581_v27 = vpop.permute.xlu1 %580 }
 0x336   :  { %823 = vpow2.f32 %v569_v25  ;;  %vm585_vm1 = vcmp.eq.s32.totalorder %v699_v26, %v581_v27 }
 0x337   :  { %v587_v28 = vsel %vm585_vm1, %v565_v21, 0.0 }
 0x338   :  { %589 = vadd.xlane.f32.xlu0 %v587_v28 }
 0x339   :  { %v584_v33 = vpop.permute.xlu1 %583 }
 0x33a   :  { %vm586_vm4 = vcmp.eq.s32.totalorder %v699_v26, %v584_v33 }
 0x33b   :  { %v588_v35 = vsel %vm586_vm4, %v566_v24, 0.0 }
 0x33f   :  { %v822_v29 = vpop.eup %821 }
 0x340   :  { %571 = vadd.xlane.f32.xlu1 %v822_v29 }
 0x343   :  { %v824_v31 = vpop.eup %823 }
 0x344   :  { %573 = vadd.xlane.f32.xlu1 %v824_v31 }
 0x348   :  { %555 = vadd.xlane.f32.xlu1 %v553_v32 }
 0x34c   :  { %557 = vadd.xlane.f32.xlu1 %v554_v34 }
 0x350   :  { %591 = vadd.xlane.f32.xlu1 %v588_v35 }
 0x36a   :  { %v534_v37 = vpop.xlane.xlu1 %533 }
 0x36b   :  { %825 = vlog2.f32 %v534_v37 }
 0x378   :  { %v826_v42 = vpop.eup %825 }
 0x379   :  { %v538_v46 = vmul.f32 0.6931472, %v826_v42 }
 0x3c1   :  { %v590_v49 = vpop.xlane.xlu0 %589 }
 0x3c9   :  { %v572_v39 = vpop.xlane.xlu1 %571 }
 0x3ca   :  { %827 = vlog2.f32 %v572_v39 }
 0x3cb   :  { %829 = vlog2.f32 %v536_v38 }
 0x3cd   :  { %v574_v40 = vpop.xlane.xlu1 %573 }
 0x3ce   :  { %831 = vlog2.f32 %v574_v40 }
 0x3d1   :  { %v556_v41 = vpop.xlane.xlu1 %555 }
 0x3d2   :  { %v559_v50 = vsub.f32 %v538_v46, %v556_v41 }
 0x3d5   :  { %v558_v44 = vpop.xlane.xlu1 %557 }
 0x3d7   :  { %v828_v43 = vpop.eup %827 }
 0x3d8   :  { %v576_v45 = vmul.f32 0.6931472, %v828_v43  ;;  %v830_v48 = vpop.eup %829 }
 0x3d9   :  { %v540_v54 = vmul.f32 0.6931472, %v830_v48  ;;  %v592_v57 = vpop.xlane.xlu1 %591 }
 0x3da   :  { %v593_v0 = vsub.f32 %v576_v45, %v590_v49 }
 0x3db   :  { %v832_v51 = vpop.eup %831  ;;  %v560_v59 = vsub.f32 %v540_v54, %v558_v44 }
 0x3dc   :  { %v595_v52 = vadd.f32 %v593_v0, %v559_v50  ;;  %v578_v55 = vmul.f32 0.6931472, %v832_v51 }
 0x3de   :  { %v608_v58 = vsel %vm604_vm6, %v595_v52, 0.0  ;;  %v594_v60 = vsub.f32 %v578_v55, %v592_v57 }
 0x3df   :  { %v610_v61 = vadd.f32 %v608_v58, %v606_v53 }
 0x3e0   :  { %v596_v62 = vadd.f32 %v594_v60, %v560_v59 }
 0x3e1   :  { %613 = vst.msk [vmem:[#allocation4] sm:$0xff] %vm120_vm5, %v610_v61 }
 0x3e2   :  { %v609_v1 = vsel %vm605_vm7, %v596_v62, 0.0 }
 0x3e3   :  { %v611_v2 = vadd.f32 %v609_v1, %v607_v63 }
 0x3e5   :  { %614 = vst.msk [vmem:[#allocation4 + $0x8] sm:$0xff] %vm120_vm5, %v611_v2 }
 0x3e8   :  { %v618_v3 = vld [vmem:[#allocation4] sm:$0xff] }
 0x3e9   :  { %v620_v5 = vsel %vm120_vm5, %v618_v3, 0.0 }
 0x3ec   :  { %v619_v4 = vld [vmem:[#allocation4 + $0x8] sm:$0xff] }
 0x3ed   :  { %v621_v6 = vsel %vm120_vm5, %v619_v4, 0.0 }
 0x3ee   :  { %v622_v7 = vadd.f32 %v621_v6, %v620_v5 }
 0x3f0   :  { %623 = vadd.xlane.f32.xlu0 %v622_v7 }
 0x479   :  { %v624_v8 = vpop.xlane.xlu0 %623 }
 0x47a   :  { %v625_v9 = vrot.slane %v624_v8, 4 }
 0x47c   :  { %v626_v10 = vadd.f32 %v625_v9, %v624_v8 }
 0x47e   :  { %v627_v11 = vrot.slane %v626_v10, 2 }
 0x480   :  { %v628_v12 = vadd.f32 %v627_v11, %v626_v10 }
 0x482   :  { %v629_v13 = vrot.slane %v628_v12, 1 }
 0x484   :  { %v630_v14 = vadd.f32 %v629_v13, %v628_v12 }
 0x486   :  { %758 = vpush %v630_v14 }
 0x4b7   :  { %s759_s30 = spop %758 }
 0x4b8   :  { %v632_v15 = vstv %s759_s30 }
 0x4b9   :  { %v633_v16 = vmul.f32 0.0625, %v632_v15 }
 0x4bb   :  { %635 = vst.msk [vmem:[#allocation11] sm:$0x1] %vm634_vm8, %v633_v16 }
 0x4bc   :  { %904 = shalt.err (!%p901_p5)
}
 0x4bd   :  { %645 = dma.vmem_to_hbm [thread:$0]  %s643_s7, 16, %s1050_s8, [#allocation7]  }
 0x4be   :  { %917 = dma.done.wait [#allocation7], 16  }
 0x4bf   :  { %918 = vsyncadd [#allocation7], 4294967280 }
 0x4c0   :  { %649 = vsyncpa [#allocation6], 1 }
 0x4c1   :  { %650 = vsyncpa [#allocation9], 1 }
 0x4c2   :  { %651 = vsyncpa [#allocation7], 1 }

</bundles_post_ra>
